<compile_context>
chip_gen: v5e
topology: v5e:2x2
jax: 0.10.0
libtpu: 0.0.40
codegen_flags: <defaults>
</compile_context>

<pallas_src>
import jax
import jax.numpy as jnp
from jax.experimental import pallas as pl
from jax.experimental.pallas import tpu as pltpu

DIMS = [835, 400, 200, 100, 50, 20, 2]
N_LAYERS = len(DIMS) - 1


def _round_up(x, m):
    return ((x + m - 1) // m) * m


# Hidden/output widths padded to 128-lane multiples; input feature dim (835)
# stays at full extent (see header note on K padding).
PAD_DIMS = [DIMS[0]] + [_round_up(d, 128) for d in DIMS[1:]]


def mlp_kernel(x_ref, *refs):
    # refs = (w1, b1, w2, b2, ..., w6, b6, o_ref)
    o_ref = refs[-1]
    wb = refs[:-1]

    # TODO(synk): nn.Dropout(0.8) after layer 1 is an inference-mode identity;
    # training-mode mask + 1/(1-p) scaling is not implemented.
    h = x_ref[...].astype(jnp.bfloat16)  # in-kernel f32 -> bf16 cast, [TB, 835]
    for li in range(N_LAYERS):
        w = wb[2 * li][...]        # bf16 [in_pad, out_pad], VMEM-resident
        b = wb[2 * li + 1][...]    # f32  [1, out_pad]
        acc = jnp.dot(h, w, preferred_element_type=jnp.float32) + b
        if li < N_LAYERS - 1:
            acc = jnp.maximum(acc, 0.0)
            h = acc.astype(jnp.bfloat16)   # bf16 feed into the next MXU pass
        else:
            o_ref[...] = acc.astype(o_ref.dtype)


def init_params(key):
    """Deterministic init mirroring PyTorch Linear default U(-1/sqrt(in), 1/sqrt(in))."""
    params = []
    for i in range(N_LAYERS):
        fan_in, fan_out = DIMS[i], DIMS[i + 1]
        key, kw, kb = jax.random.split(key, 3)
        bound = 1.0 / (fan_in ** 0.5)
        # stored as [in, out] so the kernel computes h @ W (no transposes)
        w = jax.random.uniform(kw, (fan_in, fan_out), jnp.float32, -bound, bound)
        b = jax.random.uniform(kb, (fan_out,), jnp.float32, -bound, bound)
        params.append((w, b))
    return params


def pad_params(params):
    """Zero-pad weights/biases to lane-dense widths; weights bf16, biases f32.

    Zero padding keeps the math exact: padded output columns get bias 0, pass
    through ReLU as 0, and multiply against zero weight rows in the next layer.
    """
    flat = []
    for li, (w, b) in enumerate(params):
        in_p, out_p = PAD_DIMS[li], PAD_DIMS[li + 1]
        wp = jnp.zeros((in_p, out_p), jnp.bfloat16)
        wp = wp.at[: w.shape[0], : w.shape[1]].set(w.astype(jnp.bfloat16))
        bp = jnp.zeros((1, out_p), jnp.float32)
        bp = bp.at[0, : b.shape[0]].set(b)
        flat.extend([wp, bp])
    return flat


def network_forward(x, params, *, max_tile=1024):
    assert max_tile % 8 == 0, "max_tile must be a multiple of 8 (sublane pack)"
    B = x.shape[0]
    x = x.astype(jnp.float32)
    flat = pad_params(params)

    # Batch tiling:
    #  * B <= max_tile: one full-extent tile (block dim == array dim), so no
    #    batch padding and no edge masking at all.
    #  * B  > max_tile: max_tile-row tiles (multiple of 8); Pallas masks the
    #    partial edge block, so non-multiple batches need no padding either.
    TB = B if B <= max_tile else max_tile
    grid = (pl.cdiv(B, TB),)

    in_specs = [pl.BlockSpec((TB, DIMS[0]), lambda i: (i, 0))]
    for li in range(N_LAYERS):
        in_p, out_p = PAD_DIMS[li], PAD_DIMS[li + 1]
        # Constant index_maps -> weights/biases fetched once, pinned in VMEM.
        in_specs.append(pl.BlockSpec((in_p, out_p), lambda i: (0, 0)))
        in_specs.append(pl.BlockSpec((1, out_p), lambda i: (0, 0)))

    out_spec = pl.BlockSpec((TB, PAD_DIMS[-1]), lambda i: (i, 0))

    flops = 2 * B * (
        DIMS[0] * PAD_DIMS[1]
        + sum(PAD_DIMS[i] * PAD_DIMS[i + 1] for i in range(1, N_LAYERS))
    )
    bytes_accessed = (
        int(x.size) * 4
        + sum(int(a.size) * a.dtype.itemsize for a in flat)
        + B * PAD_DIMS[-1] * 4
    )
    cost = pl.CostEstimate(
        flops=flops, transcendentals=0, bytes_accessed=bytes_accessed
    )

    out = pl.pallas_call(
        mlp_kernel,
        out_shape=jax.ShapeDtypeStruct((B, PAD_DIMS[-1]), jnp.float32),
        grid=grid,
        in_specs=in_specs,
        out_specs=out_spec,
        compiler_params=pltpu.CompilerParams(
            dimension_semantics=("parallel",),
            # Raised tile sizes need more than v5e's 16 MiB scoped default;
            # 48 MiB is safely below every generation's physical VMEM.
            vmem_limit_bytes=48 * 1024 * 1024,
        ),
        cost_estimate=cost,
    )(x, *flat)

    # Strip the lane padding of the final layer (128 -> 2).
    return out[:, : DIMS[-1]]


def network_ref(x, params):
    """Plain-JAX reference following the same bf16-compute / f32-accumulate path."""
    h = x.astype(jnp.bfloat16)
    for i, (w, b) in enumerate(params):
        acc = jnp.dot(h, w.astype(jnp.bfloat16),
                      preferred_element_type=jnp.float32) + b
        if i < len(params) - 1:
            acc = jnp.maximum(acc, 0.0)
            h = acc.astype(jnp.bfloat16)
        else:
            h = acc
    return h


if __name__ == "__main__":
    key = jax.random.PRNGKey(0)
    kx, kx2, kp = jax.random.split(key, 3)
    params = init_params(kp)

    # Small batch: single full-extent tile (no padding, no edge blocks).
    B = 16
    x = jax.random.normal(kx, (B, DIMS[0]), jnp.float32)
    out = jax.block_until_ready(network_forward(x, params))
    ref = network_ref(x, params)
    assert out.shape == (B, 2), out.shape
    assert jnp.allclose(out, ref, atol=2e-2, rtol=2e-2), \
        "mismatch vs reference (small batch)"

    # Multi-tile path with a partial (masked) edge block: 200 rows, 64-row tiles.
    B2 = 200
    x2 = jax.random.normal(kx2, (B2, DIMS[0]), jnp.float32)
    out2 = jax.block_until_ready(network_forward(x2, params, max_tile=64))
    ref2 = network_ref(x2, params)
    assert out2.shape == (B2, 2), out2.shape
    assert jnp.allclose(out2, ref2, atol=2e-2, rtol=2e-2), \
        "mismatch vs reference (tiled batch with edge block)"

    print("KERNEL_OK")
</pallas_src>

<mosaic_0001>
module attributes {stable_mosaic.version = 11 : i64} {
  func.func @mlp_kernel(%arg0: i32, %arg1: memref<16x835xf32, #tpu.memory_space<vmem>>, %arg2: memref<835x512xbf16, #tpu.memory_space<vmem>>, %arg3: memref<1x512xf32, #tpu.memory_space<vmem>>, %arg4: memref<512x256xbf16, #tpu.memory_space<vmem>>, %arg5: memref<1x256xf32, #tpu.memory_space<vmem>>, %arg6: memref<256x128xbf16, #tpu.memory_space<vmem>>, %arg7: memref<1x128xf32, #tpu.memory_space<vmem>>, %arg8: memref<128x128xbf16, #tpu.memory_space<vmem>>, %arg9: memref<1x128xf32, #tpu.memory_space<vmem>>, %arg10: memref<128x128xbf16, #tpu.memory_space<vmem>>, %arg11: memref<1x128xf32, #tpu.memory_space<vmem>>, %arg12: memref<128x128xbf16, #tpu.memory_space<vmem>>, %arg13: memref<1x128xf32, #tpu.memory_space<vmem>>, %arg14: memref<16x128xf32, #tpu.memory_space<vmem>>) attributes {dimension_semantics = [#tpu.dimension_semantics<parallel>], iteration_bounds = array<i64: 1>, scalar_prefetch = 0 : i64, scratch_operands = 0 : i64, tpu.core_type = #tpu.core_type<tc>, window_params = [{transform_indices = @transform_0, window_bounds = array<i64: 16, 835>}, {pipeline_mode = #tpu.pipeline_mode<synchronous>, transform_indices = @transform_1, window_bounds = array<i64: 835, 512>}, {pipeline_mode = #tpu.pipeline_mode<synchronous>, transform_indices = @transform_2, window_bounds = array<i64: 1, 512>}, {pipeline_mode = #tpu.pipeline_mode<synchronous>, transform_indices = @transform_3, window_bounds = array<i64: 512, 256>}, {pipeline_mode = #tpu.pipeline_mode<synchronous>, transform_indices = @transform_4, window_bounds = array<i64: 1, 256>}, {pipeline_mode = #tpu.pipeline_mode<synchronous>, transform_indices = @transform_5, window_bounds = array<i64: 256, 128>}, {pipeline_mode = #tpu.pipeline_mode<synchronous>, transform_indices = @transform_6, window_bounds = array<i64: 1, 128>}, {pipeline_mode = #tpu.pipeline_mode<synchronous>, transform_indices = @transform_7, window_bounds = array<i64: 128, 128>}, {pipeline_mode = #tpu.pipeline_mode<synchronous>, transform_indices = @transform_8, window_bounds = array<i64: 1, 128>}, {pipeline_mode = #tpu.pipeline_mode<synchronous>, transform_indices = @transform_9, window_bounds = array<i64: 128, 128>}, {pipeline_mode = #tpu.pipeline_mode<synchronous>, transform_indices = @transform_10, window_bounds = array<i64: 1, 128>}, {pipeline_mode = #tpu.pipeline_mode<synchronous>, transform_indices = @transform_11, window_bounds = array<i64: 128, 128>}, {pipeline_mode = #tpu.pipeline_mode<synchronous>, transform_indices = @transform_12, window_bounds = array<i64: 1, 128>}, {transform_indices = @transform_13, window_bounds = array<i64: 16, 128>}]} {
    %c0 = arith.constant 0 : index
    %c0_0 = arith.constant 0 : index
    %0 = vector.load %arg1[%c0, %c0_0] : memref<16x835xf32, #tpu.memory_space<vmem>>, vector<16x835xf32>
    %1 = arith.truncf %0 : vector<16x835xf32> to vector<16x835xbf16>
    %c0_1 = arith.constant 0 : index
    %c0_2 = arith.constant 0 : index
    %2 = vector.load %arg2[%c0_1, %c0_2] : memref<835x512xbf16, #tpu.memory_space<vmem>>, vector<835x512xbf16>
    %c0_3 = arith.constant 0 : index
    %c0_4 = arith.constant 0 : index
    %3 = vector.load %arg3[%c0_3, %c0_4] : memref<1x512xf32, #tpu.memory_space<vmem>>, vector<1x512xf32>
    %cst = arith.constant dense<0.000000e+00> : vector<16x512xf32>
    %4 = tpu.matmul %1, %2, %cst {dimension_numbers = #tpu.dot_dimension_numbers<[1], [0], [0], [1], [0, 0, 1, 1], [], []>} : vector<16x835xbf16>, vector<835x512xbf16>, vector<16x512xf32> -> vector<16x512xf32>
    %5 = vector.broadcast %3 : vector<1x512xf32> to vector<16x512xf32>
    %6 = arith.addf %4, %5 : vector<16x512xf32>
    %cst_5 = arith.constant 0.000000e+00 : f32
    %7 = vector.broadcast %cst_5 : f32 to vector<16x512xf32>
    %8 = arith.maximumf %6, %7 : vector<16x512xf32>
    %9 = arith.truncf %8 : vector<16x512xf32> to vector<16x512xbf16>
    %c0_6 = arith.constant 0 : index
    %c0_7 = arith.constant 0 : index
    %10 = vector.load %arg4[%c0_6, %c0_7] : memref<512x256xbf16, #tpu.memory_space<vmem>>, vector<512x256xbf16>
    %c0_8 = arith.constant 0 : index
    %c0_9 = arith.constant 0 : index
    %11 = vector.load %arg5[%c0_8, %c0_9] : memref<1x256xf32, #tpu.memory_space<vmem>>, vector<1x256xf32>
    %cst_10 = arith.constant dense<0.000000e+00> : vector<16x256xf32>
    %12 = tpu.matmul %9, %10, %cst_10 {dimension_numbers = #tpu.dot_dimension_numbers<[1], [0], [0], [1], [0, 0, 1, 1], [], []>} : vector<16x512xbf16>, vector<512x256xbf16>, vector<16x256xf32> -> vector<16x256xf32>
    %13 = vector.broadcast %11 : vector<1x256xf32> to vector<16x256xf32>
    %14 = arith.addf %12, %13 : vector<16x256xf32>
    %cst_11 = arith.constant 0.000000e+00 : f32
    %15 = vector.broadcast %cst_11 : f32 to vector<16x256xf32>
    %16 = arith.maximumf %14, %15 : vector<16x256xf32>
    %17 = arith.truncf %16 : vector<16x256xf32> to vector<16x256xbf16>
    %c0_12 = arith.constant 0 : index
    %c0_13 = arith.constant 0 : index
    %18 = vector.load %arg6[%c0_12, %c0_13] : memref<256x128xbf16, #tpu.memory_space<vmem>>, vector<256x128xbf16>
    %c0_14 = arith.constant 0 : index
    %c0_15 = arith.constant 0 : index
    %19 = vector.load %arg7[%c0_14, %c0_15] : memref<1x128xf32, #tpu.memory_space<vmem>>, vector<1x128xf32>
    %cst_16 = arith.constant dense<0.000000e+00> : vector<16x128xf32>
    %20 = tpu.matmul %17, %18, %cst_16 {dimension_numbers = #tpu.dot_dimension_numbers<[1], [0], [0], [1], [0, 0, 1, 1], [], []>} : vector<16x256xbf16>, vector<256x128xbf16>, vector<16x128xf32> -> vector<16x128xf32>
    %21 = vector.broadcast %19 : vector<1x128xf32> to vector<16x128xf32>
    %22 = arith.addf %20, %21 : vector<16x128xf32>
    %cst_17 = arith.constant 0.000000e+00 : f32
    %23 = vector.broadcast %cst_17 : f32 to vector<16x128xf32>
    %24 = arith.maximumf %22, %23 : vector<16x128xf32>
    %25 = arith.truncf %24 : vector<16x128xf32> to vector<16x128xbf16>
    %c0_18 = arith.constant 0 : index
    %c0_19 = arith.constant 0 : index
    %26 = vector.load %arg8[%c0_18, %c0_19] : memref<128x128xbf16, #tpu.memory_space<vmem>>, vector<128x128xbf16>
    %c0_20 = arith.constant 0 : index
    %c0_21 = arith.constant 0 : index
    %27 = vector.load %arg9[%c0_20, %c0_21] : memref<1x128xf32, #tpu.memory_space<vmem>>, vector<1x128xf32>
    %cst_22 = arith.constant dense<0.000000e+00> : vector<16x128xf32>
    %28 = tpu.matmul %25, %26, %cst_22 {dimension_numbers = #tpu.dot_dimension_numbers<[1], [0], [0], [1], [0, 0, 1, 1], [], []>} : vector<16x128xbf16>, vector<128x128xbf16>, vector<16x128xf32> -> vector<16x128xf32>
    %29 = vector.broadcast %27 : vector<1x128xf32> to vector<16x128xf32>
    %30 = arith.addf %28, %29 : vector<16x128xf32>
    %cst_23 = arith.constant 0.000000e+00 : f32
    %31 = vector.broadcast %cst_23 : f32 to vector<16x128xf32>
    %32 = arith.maximumf %30, %31 : vector<16x128xf32>
    %33 = arith.truncf %32 : vector<16x128xf32> to vector<16x128xbf16>
    %c0_24 = arith.constant 0 : index
    %c0_25 = arith.constant 0 : index
    %34 = vector.load %arg10[%c0_24, %c0_25] : memref<128x128xbf16, #tpu.memory_space<vmem>>, vector<128x128xbf16>
    %c0_26 = arith.constant 0 : index
    %c0_27 = arith.constant 0 : index
    %35 = vector.load %arg11[%c0_26, %c0_27] : memref<1x128xf32, #tpu.memory_space<vmem>>, vector<1x128xf32>
    %cst_28 = arith.constant dense<0.000000e+00> : vector<16x128xf32>
    %36 = tpu.matmul %33, %34, %cst_28 {dimension_numbers = #tpu.dot_dimension_numbers<[1], [0], [0], [1], [0, 0, 1, 1], [], []>} : vector<16x128xbf16>, vector<128x128xbf16>, vector<16x128xf32> -> vector<16x128xf32>
    %37 = vector.broadcast %35 : vector<1x128xf32> to vector<16x128xf32>
    %38 = arith.addf %36, %37 : vector<16x128xf32>
    %cst_29 = arith.constant 0.000000e+00 : f32
    %39 = vector.broadcast %cst_29 : f32 to vector<16x128xf32>
    %40 = arith.maximumf %38, %39 : vector<16x128xf32>
    %41 = arith.truncf %40 : vector<16x128xf32> to vector<16x128xbf16>
    %c0_30 = arith.constant 0 : index
    %c0_31 = arith.constant 0 : index
    %42 = vector.load %arg12[%c0_30, %c0_31] : memref<128x128xbf16, #tpu.memory_space<vmem>>, vector<128x128xbf16>
    %c0_32 = arith.constant 0 : index
    %c0_33 = arith.constant 0 : index
    %43 = vector.load %arg13[%c0_32, %c0_33] : memref<1x128xf32, #tpu.memory_space<vmem>>, vector<1x128xf32>
    %cst_34 = arith.constant dense<0.000000e+00> : vector<16x128xf32>
    %44 = tpu.matmul %41, %42, %cst_34 {dimension_numbers = #tpu.dot_dimension_numbers<[1], [0], [0], [1], [0, 0, 1, 1], [], []>} : vector<16x128xbf16>, vector<128x128xbf16>, vector<16x128xf32> -> vector<16x128xf32>
    %45 = vector.broadcast %43 : vector<1x128xf32> to vector<16x128xf32>
    %46 = arith.addf %44, %45 : vector<16x128xf32>
    %c0_35 = arith.constant 0 : index
    %c0_36 = arith.constant 0 : index
    %47 = vector.load %arg14[%c0_35, %c0_36] : memref<16x128xf32, #tpu.memory_space<vmem>>, vector<16x128xf32>
    tpu.vector_store %arg14[%c0_35, %c0_36], %46 {strides = array<i32>} : memref<16x128xf32, #tpu.memory_space<vmem>>, vector<16x128xf32>,
    return
  }
  func.func @transform_0(%arg0: i32) -> (i32, i32) {
    %c0_i32 = arith.constant 0 : i32
    %c0_i32_0 = arith.constant 0 : i32
    return %arg0, %c0_i32 : i32, i32
  }
  func.func @transform_1(%arg0: i32) -> (i32, i32) {
    %c0_i32 = arith.constant 0 : i32
    %c0_i32_0 = arith.constant 0 : i32
    %c0_i32_1 = arith.constant 0 : i32
    return %c0_i32, %c0_i32_0 : i32, i32
  }
  func.func @transform_2(%arg0: i32) -> (i32, i32) {
    %c0_i32 = arith.constant 0 : i32
    %c0_i32_0 = arith.constant 0 : i32
    %c0_i32_1 = arith.constant 0 : i32
    return %c0_i32, %c0_i32_0 : i32, i32
  }
  func.func @transform_3(%arg0: i32) -> (i32, i32) {
    %c0_i32 = arith.constant 0 : i32
    %c0_i32_0 = arith.constant 0 : i32
    %c0_i32_1 = arith.constant 0 : i32
    return %c0_i32, %c0_i32_0 : i32, i32
  }
  func.func @transform_4(%arg0: i32) -> (i32, i32) {
    %c0_i32 = arith.constant 0 : i32
    %c0_i32_0 = arith.constant 0 : i32
    %c0_i32_1 = arith.constant 0 : i32
    return %c0_i32, %c0_i32_0 : i32, i32
  }
  func.func @transform_5(%arg0: i32) -> (i32, i32) {
    %c0_i32 = arith.constant 0 : i32
    %c0_i32_0 = arith.constant 0 : i32
    %c0_i32_1 = arith.constant 0 : i32
    return %c0_i32, %c0_i32_0 : i32, i32
  }
  func.func @transform_6(%arg0: i32) -> (i32, i32) {
    %c0_i32 = arith.constant 0 : i32
    %c0_i32_0 = arith.constant 0 : i32
    %c0_i32_1 = arith.constant 0 : i32
    return %c0_i32, %c0_i32_0 : i32, i32
  }
  func.func @transform_7(%arg0: i32) -> (i32, i32) {
    %c0_i32 = arith.constant 0 : i32
    %c0_i32_0 = arith.constant 0 : i32
    %c0_i32_1 = arith.constant 0 : i32
    return %c0_i32, %c0_i32_0 : i32, i32
  }
  func.func @transform_8(%arg0: i32) -> (i32, i32) {
    %c0_i32 = arith.constant 0 : i32
    %c0_i32_0 = arith.constant 0 : i32
    %c0_i32_1 = arith.constant 0 : i32
    return %c0_i32, %c0_i32_0 : i32, i32
  }
  func.func @transform_9(%arg0: i32) -> (i32, i32) {
    %c0_i32 = arith.constant 0 : i32
    %c0_i32_0 = arith.constant 0 : i32
    %c0_i32_1 = arith.constant 0 : i32
    return %c0_i32, %c0_i32_0 : i32, i32
  }
  func.func @transform_10(%arg0: i32) -> (i32, i32) {
    %c0_i32 = arith.constant 0 : i32
    %c0_i32_0 = arith.constant 0 : i32
    %c0_i32_1 = arith.constant 0 : i32
    return %c0_i32, %c0_i32_0 : i32, i32
  }
  func.func @transform_11(%arg0: i32) -> (i32, i32) {
    %c0_i32 = arith.constant 0 : i32
    %c0_i32_0 = arith.constant 0 : i32
    %c0_i32_1 = arith.constant 0 : i32
    return %c0_i32, %c0_i32_0 : i32, i32
  }
  func.func @transform_12(%arg0: i32) -> (i32, i32) {
    %c0_i32 = arith.constant 0 : i32
    %c0_i32_0 = arith.constant 0 : i32
    %c0_i32_1 = arith.constant 0 : i32
    return %c0_i32, %c0_i32_0 : i32, i32
  }
  func.func @transform_13(%arg0: i32) -> (i32, i32) {
    %c0_i32 = arith.constant 0 : i32
    %c0_i32_0 = arith.constant 0 : i32
    return %arg0, %c0_i32 : i32, i32
  }
}

</mosaic_0001>

<bundles_post_ra>
// kernel: tpu_custom_call.1
= control target key start
LH: loop header
LB: loop body
LE: loop exit
PB: predicated region body
PF: predicated region fallthrough
CT: control target
= control target key end

     0   :  { %18 = vsyncpa [#allocation3], 0  ;;  %s4878_s0 = inlined_call_operand.hbm [shape: f32[16,835], index: 0, kind: input, shape index: {}]   ;;  %s4879_s1 = inlined_call_operand.hbm [shape: bf16[835,512], index: 1, kind: input, shape index: {}]   ;;  %s4880_s2 = inlined_call_operand.hbm [shape: f32[1,512], index: 2, kind: input, shape index: {}]   ;;  %s4881_s3 = inlined_call_operand.hbm [shape: bf16[512,256], index: 3, kind: input, shape index: {}]   ;;  %s4882_s4 = inlined_call_operand.vmem [shape: f32[1,256], index: 4, kind: input, shape index: {}]   ;;  %s4883_s5 = inlined_call_operand.hbm [shape: bf16[256,128], index: 5, kind: input, shape index: {}]   ;;  %s4884_s6 = inlined_call_operand.vmem [shape: f32[1,128], index: 6, kind: input, shape index: {}]   ;;  %s4885_s7 = inlined_call_operand.hbm [shape: bf16[128,128], index: 7, kind: input, shape index: {}]   ;;  %s4886_s8 = inlined_call_operand.vmem [shape: f32[1,128], index: 8, kind: input, shape index: {}]   ;;  %s4887_s9 = inlined_call_operand.hbm [shape: bf16[128,128], index: 9, kind: input, shape index: {}]   ;;  %s4888_s10 = inlined_call_operand.vmem [shape: f32[1,128], index: 10, kind: input, shape index: {}]   ;;  %s4889_s11 = inlined_call_operand.hbm [shape: bf16[128,128], index: 11, kind: input, shape index: {}]   ;;  %s4890_s12 = inlined_call_operand.vmem [shape: f32[1,128], index: 12, kind: input, shape index: {}]   ;;  %s4891_s13 = inlined_call_operand.hbm [shape: f32[16,128], index: 13, kind: output, shape index: {}]  }
   0x1   :  { %19 = vsyncpa [#allocation6], 0 }
   0x2   :  { %20 = vsyncpa [#allocation9], 0 }
   0x3   :  { %21 = vsyncpa [#allocation12], 0 }
   0x4   :  { %22 = vsyncpa [#allocation15], 0  ;;  %s41_s27 = sshll.u32 %s4879_s1, 4  ;;  %s42_s27 = int_to_ptr.hbm [resolvable:$true] %s41_s27 }
   0x5   :  { %23 = vsyncpa [#allocation4], 0  ;;  %s4646_s28 = smov [#allocation5]   ;;  %s65_s15 = sshll.u32 %s4881_s3, 4  ;;  %s66_s15 = int_to_ptr.hbm [resolvable:$true] %s65_s15 }
   0x6   :  { %s43_s29 = sshll.u32 %s4646_s28, 4  ;;  %s4647_s16 = smov 256   ;;  %s44_s29 = int_to_ptr.vmem [resolvable:$true] %s43_s29 }
   0x7   :  { %s4648_s17 = smov 16   ;;  %s4649_s18 = smov [#allocation8]  }
   0x8   :  { %49 = dma.hbm_to_vmem [thread:$0]  %s42_s27, 26880, %s44_s29, [#allocation6], %s4647_s16, %s4647_s16, %s4648_s17  }
   0x9   :  { %s67_s19 = sshll.u32 %s4649_s18, 4  ;;  %s4650_s20 = smov 128   ;;  %s68_s19 = int_to_ptr.vmem [resolvable:$true] %s67_s19 }
   0xa   :  { %s4651_s21 = smov 8   ;;  %s95_s23 = sshll.u32 %s4885_s7, 4  ;;  %s96_s23 = int_to_ptr.hbm [resolvable:$true] %s95_s23 }
   0xb   :  { %73 = dma.hbm_to_vmem [thread:$0]  %s66_s15, 8192, %s68_s19, [#allocation9], %s4650_s20, %s4650_s20, %s4651_s21  }
   0xc   :  { %s4652_s24 = smov [#allocation11]   ;;  %s28_s27 = sshll.u32 %s4878_s0, 4  ;;  %s29_s27 = int_to_ptr.hbm [resolvable:$true] %s28_s27 }
   0xd   :  { %s97_s3 = sshll.u32 %s4652_s24, 4  ;;  %s4653_s28 = smov 64   ;;  %s98_s3 = int_to_ptr.vmem [resolvable:$true] %s97_s3 }
   0xe   :  { %s4654_s29 = smov 4   ;;  %s4655_s30 = smov [#allocation2]  }
   0xf   :  { %103 = dma.hbm_to_vmem [thread:$0]  %s96_s23, 1024, %s98_s3, [#allocation12], %s4653_s28, %s4653_s28, %s4654_s29  }
  0x10   :  { %s30_s14 = sshll.u32 %s4655_s30, 4  ;;  %s4656_s15 = smov 896   ;;  %s31_s14 = int_to_ptr.vmem [resolvable:$true] %s30_s14 }
  0x11   :  { %s4657_s7 = smov 56   ;;  %s55_s18 = sshll.u32 %s4880_s2, 4  ;;  %s56_s18 = int_to_ptr.hbm [resolvable:$true] %s55_s18 }
  0x12   :  { %36 = dma.hbm_to_vmem [thread:$0]  %s29_s27, 1792, %s31_s14, [#allocation3], %s4656_s15, %s4656_s15, %s4657_s7  }
  0x13   :  { %s4658_s19 = smov [#allocation7]   ;;  %s80_s24 = sshll.u32 %s4883_s5, 4  ;;  %s81_s24 = int_to_ptr.hbm [resolvable:$true] %s80_s24 }
  0x14   :  { %s57_s0 = sshll.u32 %s4658_s19, 4  ;;  %s4659_s23 = smov [#allocation10]   ;;  %s58_s0 = int_to_ptr.vmem [resolvable:$true] %s57_s0 }
  0x15   :  { %60 = dma.hbm_to_vmem [thread:$0]  %s56_s18, 64, %s58_s0, [#allocation6]  }
  0x16   :  { %s82_s3 = sshll.u32 %s4659_s23, 4  ;;  %s110_s27 = sshll.u32 %s4887_s9, 4  ;;  %s83_s3 = int_to_ptr.vmem [resolvable:$true] %s82_s3  ;;  %s111_s27 = int_to_ptr.hbm [resolvable:$true] %s110_s27 }
  0x17   :  { %88 = dma.hbm_to_vmem [thread:$0]  %s81_s24, 2048, %s83_s3, [#allocation9], %s4653_s28, %s4653_s28, %s4654_s29  }
  0x18   :  { %s125_s14 = sshll.u32 %s4889_s11, 4  ;;  %s4660_s15 = smov [#allocation13]   ;;  %s126_s14 = int_to_ptr.hbm [resolvable:$true] %s125_s14 }
  0x19   :  { %s112_s5 = sshll.u32 %s4660_s15, 4  ;;  %s4661_s7 = smov [#allocation14]   ;;  %s113_s5 = int_to_ptr.vmem [resolvable:$true] %s112_s5 }
  0x1a   :  { %118 = dma.hbm_to_vmem [thread:$0]  %s111_s27, 1024, %s113_s5, [#allocation12], %s4653_s28, %s4653_s28, %s4654_s29  }
  0x1b   :  { %s127_s9 = sshll.u32 %s4661_s7, 4  ;;  %s128_s9 = int_to_ptr.vmem [resolvable:$true] %s127_s9 }
  0x1c   :  { %133 = dma.hbm_to_vmem [thread:$0]  %s126_s14, 1024, %s128_s9, [#allocation15], %s4653_s28, %s4653_s28, %s4654_s29  }
  0x1d   :  { %4634 = dma.done.wait [#allocation3], 1792  }
  0x1e   :  { %4635 = vsyncadd [#allocation3], 4294965504 }
  0x1f   :  { %4636 = dma.done.wait [#allocation6], 26944  }
  0x20   :  { %4637 = vsyncadd [#allocation6], 4294940352 }
  0x21   :  { %4638 = dma.done.wait [#allocation9], 10240  }
  0x22   :  { %4639 = vsyncadd [#allocation9], 4294957056 }
  0x23   :  { %4640 = dma.done.wait [#allocation12], 2048  }
  0x24   :  { %4641 = vsyncadd [#allocation12], 4294965248 }
  0x25   :  { %4642 = dma.done.wait [#allocation15], 1024  }
  0x26   :  { %4643 = vsyncadd [#allocation15], 4294966272  ;;  %v2946_v0 = vld [vmem:[#allocation5 + $0xe0] sm:$0xf]  ;;  %v4114_v1 = vld [vmem:[#allocation5 + $0xec] sm:$0xf0] }
  0x27   :  { %v3074_v2 = vld [vmem:[#allocation5 + $0x1e0] sm:$0xf]  ;;  %v2947_v3 = vor.u32 %v4114_v1, %v2946_v0  ;;  %v4146_v4 = vld [vmem:[#allocation5 + $0x1ec] sm:$0xf0]  ;;  %vm1464_vm0 = vcmask 1040384   ;;  %vm1465_vm1 = vcmask 1041408  }
  0x28   :  { %v3202_v5 = vld [vmem:[#allocation5 + $0x2e0] sm:$0xf]  ;;  %v4178_v6 = vld [vmem:[#allocation5 + $0x2ec] sm:$0xf0]  ;;  %v3075_v7 = vor.u32 %v4146_v4, %v3074_v2  ;;  %vm1460_vm2 = vcmask 547840   ;;  %s4663_s0 = smov [#allocation16]  }
  0x29   :  { %v3203_v8 = vor.u32 %v4178_v6, %v3202_v5  ;;  %v3330_v9 = vld [vmem:[#allocation5 + $0x3e0] sm:$0xf]  ;;  %v4210_v10 = vld [vmem:[#allocation5 + $0x3ec] sm:$0xf0]  ;;  %1480 = vmatpush.bf16.msra.mxu0 %v2947_v3  ;;  %s2813_s1 = sshll.u32 %s4663_s0, 4  ;;  %s2814_s1 = int_to_ptr.vmem [resolvable:$true] %s2813_s1 }
  0x2a   :  { %v2930_v11 = vld [vmem:[#allocation5 + $0xc0] sm:$0xf]  ;;  %v3331_v12 = vor.u32 %v4210_v10, %v3330_v9  ;;  %v4110_v13 = vld [vmem:[#allocation5 + $0xcc] sm:$0xf0]  ;;  %1494 = vmatpush.bf16.msra.mxu1 %v3075_v7 }
  0x2b   :  { %v3058_v14 = vld [vmem:[#allocation5 + $0x1c0] sm:$0xf]  ;;  %v4142_v15 = vld [vmem:[#allocation5 + $0x1cc] sm:$0xf0]  ;;  %1508 = vmatpush.bf16.msra.mxu2 %v3203_v8  ;;  %v2931_v16 = vor.u32 %v4110_v13, %v2930_v11 }
  0x2c   :  { %v3059_v17 = vor.u32 %v4142_v15, %v3058_v14  ;;  %v3186_v18 = vld [vmem:[#allocation5 + $0x2c0] sm:$0xf]  ;;  %v4174_v19 = vld [vmem:[#allocation5 + $0x2cc] sm:$0xf0]  ;;  %1522 = vmatpush.bf16.msra.mxu3 %v3331_v12 }
  0x2d   :  { %v3314_v20 = vld [vmem:[#allocation5 + $0x3c0] sm:$0xf]  ;;  %v3187_v21 = vor.u32 %v4174_v19, %v3186_v18  ;;  %v4206_v22 = vld [vmem:[#allocation5 + $0x3cc] sm:$0xf0]  ;;  %1481 = vmatpush.bf16.msra.mxu0 %v2931_v16 }
  0x2e   :  { %v2914_v23 = vld [vmem:[#allocation5 + $0xa0] sm:$0xf]  ;;  %v4106_v24 = vld [vmem:[#allocation5 + $0xac] sm:$0xf0]  ;;  %v3315_v25 = vor.u32 %v4206_v22, %v3314_v20  ;;  %1495 = vmatpush.bf16.msra.mxu1 %v3059_v17  ;;  %v4662_v20 = vmov 65535  }
  0x2f   :  { %v3042_v26 = vld [vmem:[#allocation5 + $0x1a0] sm:$0xf]  ;;  %v4138_v27 = vld [vmem:[#allocation5 + $0x1ac] sm:$0xf0]  ;;  %v2915_v29 = vor.u32 %v4106_v24, %v2914_v23  ;;  %1509 = vmatpush.bf16.msra.mxu2 %v3187_v21  ;;  %v1466_v21 = vsel %vm1464_vm0, 4294967295, %v4662_v20 }
  0x30   :  { %v3170_v28 = vld [vmem:[#allocation5 + $0x2a0] sm:$0xf]  ;;  %v4170_v30 = vld [vmem:[#allocation5 + $0x2ac] sm:$0xf0]  ;;  %v3043_v33 = vor.u32 %v4138_v27, %v3042_v26  ;;  %1523 = vmatpush.bf16.msra.mxu3 %v3315_v25 }
  0x31   :  { %v3298_v31 = vld [vmem:[#allocation5 + $0x3a0] sm:$0xf]  ;;  %v4202_v32 = vld [vmem:[#allocation5 + $0x3ac] sm:$0xf0]  ;;  %v3171_v34 = vor.u32 %v4170_v30, %v3170_v28  ;;  %1482 = vmatpush.bf16.msra.mxu0 %v2915_v29 }
  0x32   :  { %v2898_v35 = vld [vmem:[#allocation5 + $0x80] sm:$0xf]  ;;  %v4102_v36 = vld [vmem:[#allocation5 + $0x8c] sm:$0xf0]  ;;  %v3299_v38 = vor.u32 %v4202_v32, %v3298_v31  ;;  %1496 = vmatpush.bf16.msra.mxu1 %v3043_v33 }
  0x33   :  { %v3026_v37 = vld [vmem:[#allocation5 + $0x180] sm:$0xf]  ;;  %v4134_v39 = vld [vmem:[#allocation5 + $0x18c] sm:$0xf0]  ;;  %v2899_v44 = vor.u32 %v4102_v36, %v2898_v35  ;;  %1510 = vmatpush.bf16.msra.mxu2 %v3171_v34 }
  0x34   :  { %v3154_v40 = vld [vmem:[#allocation5 + $0x280] sm:$0xf]  ;;  %v4166_v41 = vld [vmem:[#allocation5 + $0x28c] sm:$0xf0]  ;;  %v3027_v45 = vor.u32 %v4134_v39, %v3026_v37  ;;  %1524 = vmatpush.bf16.msra.mxu3 %v3299_v38  ;;  %v4778_v38 = vsel %vm1465_vm1, %v1466_v21, 0 }
  0x35   :  { %v3282_v42 = vld [vmem:[#allocation5 + $0x380] sm:$0xf]  ;;  %v4198_v43 = vld [vmem:[#allocation5 + $0x38c] sm:$0xf0]  ;;  %v3155_v46 = vor.u32 %v4166_v41, %v3154_v40  ;;  %1483 = vmatpush.bf16.msra.mxu0 %v2899_v44  ;;  %v4112_v41 = vld [vmem:[#allocation5 + $0xe4] sm:$0xf] }
  0x36   :  { %v2882_v47 = vld [vmem:[#allocation5 + $0x60] sm:$0xf]  ;;  %v4098_v48 = vld [vmem:[#allocation5 + $0x6c] sm:$0xf0]  ;;  %v3283_v50 = vor.u32 %v4198_v43, %v3282_v42  ;;  %1497 = vmatpush.bf16.msra.mxu1 %v3027_v45  ;;  %v2948_v42 = vld [vmem:[#allocation5 + $0xf0] sm:$0xf0] }
  0x37   :  { %v3010_v49 = vld [vmem:[#allocation5 + $0x160] sm:$0xf]  ;;  %v4130_v51 = vld [vmem:[#allocation5 + $0x16c] sm:$0xf0]  ;;  %v2883_v56 = vor.u32 %v4098_v48, %v2882_v47  ;;  %1511 = vmatpush.bf16.msra.mxu2 %v3155_v46 }
  0x38   :  { %v3138_v52 = vld [vmem:[#allocation5 + $0x260] sm:$0xf]  ;;  %v4162_v53 = vld [vmem:[#allocation5 + $0x26c] sm:$0xf0]  ;;  %v3011_v57 = vor.u32 %v4130_v51, %v3010_v49  ;;  %1525 = vmatpush.bf16.msra.mxu3 %v3283_v50 }
  0x39   :  { %v3266_v54 = vld [vmem:[#allocation5 + $0x360] sm:$0xf]  ;;  %v4194_v55 = vld [vmem:[#allocation5 + $0x36c] sm:$0xf0]  ;;  %v3139_v58 = vor.u32 %v4162_v53, %v3138_v52  ;;  %1484 = vmatpush.bf16.msra.mxu0 %v2883_v56  ;;  %v2951_v53 = vor.u32 %v4112_v41, %v2948_v42  ;;  %v2884_v41 = vld [vmem:[#allocation5 + $0x70] sm:$0xf0] }
  0x3a   :  { %v2866_v59 = vld [vmem:[#allocation5 + $0x40] sm:$0xf]  ;;  %v4094_v60 = vld [vmem:[#allocation5 + $0x4c] sm:$0xf0]  ;;  %v3267_v62 = vor.u32 %v4194_v55, %v3266_v54  ;;  %1498 = vmatpush.bf16.msra.mxu1 %v3011_v57  ;;  %v4108_v54 = vld [vmem:[#allocation5 + $0xc4] sm:$0xf] }
  0x3b   :  { %v2994_v61 = vld [vmem:[#allocation5 + $0x140] sm:$0xf]  ;;  %v4126_v63 = vld [vmem:[#allocation5 + $0x14c] sm:$0xf0]  ;;  %v2867_v4 = vor.u32 %v4094_v60, %v2866_v59  ;;  %1512 = vmatpush.bf16.msra.mxu2 %v3139_v58  ;;  %v2932_v55 = vld [vmem:[#allocation5 + $0xd0] sm:$0xf0] }
  0x3c   :  { %v3122_v0 = vld [vmem:[#allocation5 + $0x240] sm:$0xf]  ;;  %v4158_v1 = vld [vmem:[#allocation5 + $0x24c] sm:$0xf0]  ;;  %v2995_v5 = vor.u32 %v4126_v63, %v2994_v61  ;;  %1526 = vmatpush.bf16.msra.mxu3 %v3267_v62  ;;  %v178_v57 = vld [vmem:[#allocation2 + $0x48] sm:$0xff] }
  0x3d   :  { %v3250_v2 = vld [vmem:[#allocation5 + $0x340] sm:$0xf]  ;;  %v4190_v3 = vld [vmem:[#allocation5 + $0x34c] sm:$0xf0]  ;;  %v3123_v6 = vor.u32 %v4158_v1, %v3122_v0  ;;  %1485 = vmatpush.bf16.msra.mxu0 %v2867_v4  ;;  %v176_v59 = vld [vmem:[#allocation2 + $0x38] sm:$0xff] }
  0x3e   :  { %v2850_v7 = vld [vmem:[#allocation5 + $0x20] sm:$0xf]  ;;  %v4090_v8 = vld [vmem:[#allocation5 + $0x2c] sm:$0xf0]  ;;  %v3251_v10 = vor.u32 %v4190_v3, %v3250_v2  ;;  %1499 = vmatpush.bf16.msra.mxu1 %v2995_v5  ;;  %v172_v0 = vld [vmem:[#allocation2 + $0x18] sm:$0xff] }
  0x3f   :  { %v2978_v9 = vld [vmem:[#allocation5 + $0x120] sm:$0xf]  ;;  %v4122_v11 = vld [vmem:[#allocation5 + $0x12c] sm:$0xf0]  ;;  %v2851_v17 = vor.u32 %v4090_v8, %v2850_v7  ;;  %1513 = vmatpush.bf16.msra.mxu2 %v3123_v6  ;;  %v2935_v8 = vor.u32 %v4108_v54, %v2932_v55  ;;  %v4144_v42 = vld [vmem:[#allocation5 + $0x1e4] sm:$0xf] }
  0x40   :  { %v3106_v12 = vld [vmem:[#allocation5 + $0x220] sm:$0xf]  ;;  %v4154_v13 = vld [vmem:[#allocation5 + $0x22c] sm:$0xf0]  ;;  %v2979_v22 = vor.u32 %v4122_v11, %v2978_v9  ;;  %1527 = vmatpush.bf16.msra.mxu3 %v3251_v10  ;;  %v4104_v11 = vld [vmem:[#allocation5 + $0xa4] sm:$0xf] }
  0x41   :  { %v3234_v14 = vld [vmem:[#allocation5 + $0x320] sm:$0xf]  ;;  %v4186_v15 = vld [vmem:[#allocation5 + $0x32c] sm:$0xf0]  ;;  %v3107_v23 = vor.u32 %v4154_v13, %v3106_v12  ;;  %1486 = vmatpush.bf16.msra.mxu0 %v2851_v17  ;;  %v2916_v12 = vld [vmem:[#allocation5 + $0xb0] sm:$0xf0] }
  0x42   :  { %v4773_v16 = vld [vmem:[#allocation5 + $0x680] sm:$0x33]  ;;  %v4086_v24 = vld [vmem:[#allocation5 + $0xc] sm:$0xf0]  ;;  %v3235_v27 = vor.u32 %v4186_v15, %v3234_v14  ;;  %1500 = vmatpush.bf16.msra.mxu1 %v2979_v22  ;;  %v170_v13 = vld [vmem:[#allocation2 + $0x8] sm:$0xff] }
  0x43   :  { %v2834_v18 = vld [vmem:[#allocation5] sm:$0xf]  ;;  %v1036_v19 = vunpack.c.l.b16 %v4773_v16  ;;  %v4118_v26 = vld [vmem:[#allocation5 + $0x10c] sm:$0xf0]  ;;  %1514 = vmatpush.bf16.msra.mxu2 %v3107_v23  ;;  %v2919_v23 = vor.u32 %v4104_v11, %v2916_v12  ;;  %v4092_v55 = vld [vmem:[#allocation5 + $0x44] sm:$0xf] }
  0x44   :  { %v2962_v25 = vld [vmem:[#allocation5 + $0x100] sm:$0xf]  ;;  %v4150_v29 = vld [vmem:[#allocation5 + $0x20c] sm:$0xf0]  ;;  %v2835_v35 = vor.u32 %v4086_v24, %v2834_v18  ;;  %1528 = vmatpush.bf16.msra.mxu3 %v3235_v27  ;;  %v4100_v27 = vld [vmem:[#allocation5 + $0x84] sm:$0xf] }
  0x45   :  { %v3090_v28 = vld [vmem:[#allocation5 + $0x200] sm:$0xf]  ;;  %v4182_v31 = vld [vmem:[#allocation5 + $0x30c] sm:$0xf0]  ;;  %v1248_v34 = vpack.c.b16 %v1036_v19, %v1036_v19  ;;  %v2963_v39 = vor.u32 %v4118_v26, %v2962_v25 }
  0x46   :  { %v3218_v30 = vld [vmem:[#allocation5 + $0x300] sm:$0xf]  ;;  %v4242_v33 = vld [vmem:[#allocation5 + $0x4ec] sm:$0xf0]  ;;  %v3091_v40 = vor.u32 %v4150_v29, %v3090_v28  ;;  %1487 = vmatpush.bf16.msra.mxu0 %v2835_v35  ;;  %v2900_v28 = vld [vmem:[#allocation5 + $0x90] sm:$0xf0] }
  0x47   :  { %v3458_v32 = vld [vmem:[#allocation5 + $0x4e0] sm:$0xf]  ;;  %v4274_v37 = vld [vmem:[#allocation5 + $0x5ec] sm:$0xf0]  ;;  %v3219_v43 = vor.u32 %v4182_v31, %v3218_v30  ;;  %v1469_v49 = vand.u32 %v4778_v38, %v1248_v34  ;;  %1501 = vmatpush.bf16.msra.mxu1 %v2963_v39 }
  0x48   :  { %v3586_v36 = vld [vmem:[#allocation5 + $0x5e0] sm:$0xf]  ;;  %v3459_v44 = vor.u32 %v4242_v33, %v3458_v32  ;;  %v4238_v46 = vld [vmem:[#allocation5 + $0x4cc] sm:$0xf0]  ;;  %1515 = vmatpush.bf16.msra.mxu2 %v3091_v40  ;;  %v4096_v40 = vld [vmem:[#allocation5 + $0x64] sm:$0xf] }
  0x49   :  { %v3442_v45 = vld [vmem:[#allocation5 + $0x4c0] sm:$0xf]  ;;  %v3587_v48 = vor.u32 %v4274_v37, %v3586_v36  ;;  %v4270_v50 = vld [vmem:[#allocation5 + $0x5cc] sm:$0xf0]  ;;  %1529 = vmatpush.bf16.msra.mxu3 %v3219_v43  ;;  %v2903_v36 = vor.u32 %v4100_v27, %v2900_v28  ;;  %v3076_v43 = vld [vmem:[#allocation5 + $0x1f0] sm:$0xf0] }
  0x4a   :  { %v3570_v47 = vld [vmem:[#allocation5 + $0x5c0] sm:$0xf]  ;;  %v4290_v52 = vld [vmem:[#allocation5 + $0x66c] sm:$0xf0]  ;;  %1536 = vmatpush.bf16.msrb.mxu0 %v3459_v44  ;;  %v3443_v60 = vor.u32 %v4238_v46, %v3442_v45  ;;  %v4208_v27 = vld [vmem:[#allocation5 + $0x3e4] sm:$0xf] }
  0x4b   :  { %v3650_v51 = vld [vmem:[#allocation5 + $0x660] sm:$0xf]  ;;  %v169_v58 = vld [vmem:[#allocation2] sm:$0xff]  ;;  %1550 = vmatpush.bf16.msrb.mxu1 %v3587_v48  ;;  %v3571_v2 = vor.u32 %v4270_v50, %v3570_v47  ;;  %v182_v50 = vld [vmem:[#allocation2 + $0x68] sm:$0xff] }
  0x4c   :  { %v171_v56 = vld [vmem:[#allocation2 + $0x10] sm:$0xff]  ;;  %v4783_v63 = vpack.c.bf16 %v176_v59, %v169_v58  ;;  %1567 = vmatpush.bf16.msrb.mxu2 %v1469_v49  ;;  %v3651_v3 = vor.u32 %v4290_v52, %v3650_v51  ;;  %v4234_v4 = vld [vmem:[#allocation5 + $0x4ac] sm:$0xf0]  ;;  %v2887_v51 = vor.u32 %v4096_v40, %v2884_v41  ;;  %v3079_v52 = vor.u32 %v4144_v42, %v3076_v43  ;;  %v3060_v58 = vld [vmem:[#allocation5 + $0x1d0] sm:$0xf0] }
  0x4d   :  { %v3426_v61 = vld [vmem:[#allocation5 + $0x4a0] sm:$0xf]  ;;  %v4781_v62 = vpack.c.bf16 %v178_v57, %v171_v56  ;;  %v4266_v6 = vld [vmem:[#allocation5 + $0x5ac] sm:$0xf0]  ;;  %1578 = vmatpush.bf16.msrb.mxu3 %v2951_v53  ;;  %v2868_v56 = vld [vmem:[#allocation5 + $0x50] sm:$0xf0] }
  0x4e   :  { %v179_v1 = vld [vmem:[#allocation2 + $0x50] sm:$0xff]  ;;  %v4286_v10 = vld [vmem:[#allocation5 + $0x64c] sm:$0xf0]  ;;  %1488 = vmatmul.bf16.vlgmr.msra.gmra.mxu0 %v4783_v63  ;;  %v3427_v15 = vor.u32 %v4234_v4, %v3426_v61  ;;  %v3332_v28 = vld [vmem:[#allocation5 + $0x3f0] sm:$0xf0] }
  0x4f   :  { %v3554_v5 = vld [vmem:[#allocation5 + $0x5a0] sm:$0xf]  ;;  %v4785_v7 = vpack.c.bf16 %v179_v1, %v172_v0  ;;  %1516 = vmatmul.bf16.vlgmr.msra.gmra.mxu2 %v4781_v62  ;;  %v177_v14 = vld [vmem:[#allocation2 + $0x40] sm:$0xff]  ;;  %1537 = vmatpush.bf16.msrb.mxu0 %v3443_v60  ;;  %v4140_v57 = vld [vmem:[#allocation5 + $0x1c4] sm:$0xf]  ;;  %v3335_v43 = vor.u32 %v4208_v27, %v3332_v28 }
  0x50   :  { %v3634_v9 = vld [vmem:[#allocation5 + $0x640] sm:$0xf]  ;;  %v4790_v17 = vpack.c.bf16 %v177_v14, %v170_v13  ;;  %1551 = vmatpush.bf16.msrb.mxu1 %v3571_v2  ;;  %1568 = vmatpush.bf16.msrb.mxu2 %v3651_v3  ;;  %v3555_v18 = vor.u32 %v4266_v6, %v3554_v5  ;;  %v4230_v21 = vld [vmem:[#allocation5 + $0x48c] sm:$0xf0]  ;;  %v2871_v2 = vor.u32 %v4092_v55, %v2868_v56  ;;  %v4088_v6 = vld [vmem:[#allocation5 + $0x24] sm:$0xf] }
  0x51   :  { %1530 = vmatmul.bf16.vlgmr.msra.gmra.mxu3 %v4785_v7  ;;  %v3635_v19 = vor.u32 %v4286_v10, %v3634_v9  ;;  %v3410_v20 = vld [vmem:[#allocation5 + $0x480] sm:$0xf]  ;;  %v4262_v24 = vld [vmem:[#allocation5 + $0x58c] sm:$0xf0]  ;;  %v3063_v3 = vor.u32 %v4140_v57, %v3060_v58  ;;  %v4136_v9 = vld [vmem:[#allocation5 + $0x1a4] sm:$0xf] }
  0x52   :  { %v3538_v22 = vld [vmem:[#allocation5 + $0x580] sm:$0xf]  ;;  %1579 = vmatpush.bf16.msrb.mxu3 %v2935_v8  ;;  %v4282_v26 = vld [vmem:[#allocation5 + $0x62c] sm:$0xf0]  ;;  %1502 = vmatmul.bf16.vlgmr.msra.gmra.mxu1 %v4790_v17  ;;  %v3411_v29 = vor.u32 %v4230_v21, %v3410_v20  ;;  %v2852_v8 = vld [vmem:[#allocation5 + $0x30] sm:$0xf0] }
  0x53   :  { %v3618_v25 = vld [vmem:[#allocation5 + $0x620] sm:$0xf]  ;;  %1538 = vmatpush.bf16.msrb.mxu0 %v3427_v15  ;;  %v3539_v31 = vor.u32 %v4262_v24, %v3538_v22  ;;  %v4226_v33 = vld [vmem:[#allocation5 + $0x46c] sm:$0xf0]  ;;  %v3044_v10 = vld [vmem:[#allocation5 + $0x1b0] sm:$0xf0]  ;;  %v2855_v21 = vor.u32 %v4088_v6, %v2852_v8 }
  0x54   :  { %v3394_v30 = vld [vmem:[#allocation5 + $0x460] sm:$0xf]  ;;  %1552 = vmatpush.bf16.msrb.mxu1 %v3555_v18  ;;  %1569 = vmatpush.bf16.msrb.mxu2 %v3635_v19  ;;  %v3619_v32 = vor.u32 %v4282_v26, %v3618_v25  ;;  %v4258_v35 = vld [vmem:[#allocation5 + $0x56c] sm:$0xf0]  ;;  %v4084_v19 = vld [vmem:[#allocation5 + $0x4] sm:$0xf]  ;;  %v3047_v22 = vor.u32 %v4136_v9, %v3044_v10 }
  0x55   :  { %v3522_v34 = vld [vmem:[#allocation5 + $0x560] sm:$0xf]  ;;  %v4278_v39 = vld [vmem:[#allocation5 + $0x60c] sm:$0xf0]  ;;  %v3395_v44 = vor.u32 %v4226_v33, %v3394_v30  ;;  %v2836_v20 = vld [vmem:[#allocation5 + $0x10] sm:$0xf0] }
  0x56   :  { %1580 = vmatpush.bf16.msrb.mxu3 %v2919_v23  ;;  %v3602_v37 = vld [vmem:[#allocation5 + $0x600] sm:$0xf]  ;;  %v3523_v46 = vor.u32 %v4258_v35, %v3522_v34  ;;  %v4222_v48 = vld [vmem:[#allocation5 + $0x44c] sm:$0xf0]  ;;  %v4132_v23 = vld [vmem:[#allocation5 + $0x184] sm:$0xf] }
  0x57   :  { %1539 = vmatpush.bf16.msrb.mxu0 %v3411_v29  ;;  %v3378_v45 = vld [vmem:[#allocation5 + $0x440] sm:$0xf]  ;;  %v3603_v47 = vor.u32 %v4278_v39, %v3602_v37  ;;  %v4254_v54 = vld [vmem:[#allocation5 + $0x54c] sm:$0xf0]  ;;  %v4176_v24 = vld [vmem:[#allocation5 + $0x2e4] sm:$0xf]  ;;  %v2839_v39 = vor.u32 %v4084_v19, %v2836_v20 }
  0x58   :  { %1553 = vmatpush.bf16.msrb.mxu1 %v3539_v31  ;;  %1570 = vmatpush.bf16.msrb.mxu2 %v3619_v32  ;;  %v175_v49 = vld [vmem:[#allocation2 + $0x30] sm:$0xff]  ;;  %v3379_v59 = vor.u32 %v4222_v48, %v3378_v45  ;;  %v4218_v1 = vld [vmem:[#allocation5 + $0x42c] sm:$0xf0]  ;;  %v3204_v25 = vld [vmem:[#allocation5 + $0x2f0] sm:$0xf0] }
  0x59   :  { %v3506_v53 = vld [vmem:[#allocation5 + $0x540] sm:$0xf]  ;;  %v4793_v60 = vpack.c.bf16 %v182_v50, %v175_v49  ;;  %v4250_v5 = vld [vmem:[#allocation5 + $0x52c] sm:$0xf0]  ;;  %v3028_v26 = vld [vmem:[#allocation5 + $0x190] sm:$0xf0]  ;;  %v3207_v34 = vor.u32 %v4176_v24, %v3204_v25 }
  0x5a   :  { %1581 = vmatpush.bf16.msrb.mxu3 %v2903_v36  ;;  %v3507_v61 = vor.u32 %v4254_v54, %v3506_v53  ;;  %v3362_v0 = vld [vmem:[#allocation5 + $0x420] sm:$0xf]  ;;  %v4214_v13 = vld [vmem:[#allocation5 + $0x40c] sm:$0xf0]  ;;  %v4240_v30 = vld [vmem:[#allocation5 + $0x4e4] sm:$0xf]  ;;  %v3031_v40 = vor.u32 %v4132_v23, %v3028_v26 }
  0x5b   :  { %1540 = vmatpush.bf16.msrb.mxu0 %v3395_v44  ;;  %v3490_v4 = vld [vmem:[#allocation5 + $0x520] sm:$0xf]  ;;  %v3363_v11 = vor.u32 %v4218_v1, %v3362_v0  ;;  %v4246_v18 = vld [vmem:[#allocation5 + $0x50c] sm:$0xf0]  ;;  %v3460_v31 = vld [vmem:[#allocation5 + $0x4f0] sm:$0xf0] }
  0x5c   :  { %1554 = vmatpush.bf16.msrb.mxu1 %v3523_v46  ;;  %1571 = vmatpush.bf16.msrb.mxu2 %v3603_v47  ;;  %v3346_v12 = vld [vmem:[#allocation5 + $0x400] sm:$0xf]  ;;  %v3491_v15 = vor.u32 %v4250_v5, %v3490_v4  ;;  %v173_v32 = vld [vmem:[#allocation2 + $0x20] sm:$0xff]  ;;  %v180_v35 = vld [vmem:[#allocation2 + $0x58] sm:$0xff]  ;;  %v3463_v44 = vor.u32 %v4240_v30, %v3460_v31 }
  0x5d   :  { %v3474_v14 = vld [vmem:[#allocation5 + $0x500] sm:$0xf]  ;;  %v3347_v29 = vor.u32 %v4214_v13, %v3346_v12  ;;  %v174_v36 = vld [vmem:[#allocation2 + $0x28] sm:$0xff]  ;;  %v181_v37 = vld [vmem:[#allocation2 + $0x60] sm:$0xff]  ;;  %v4797_v48 = vpack.c.bf16 %v180_v35, %v173_v32 }
  0x5e   :  { %1582 = vmatpush.bf16.msrb.mxu3 %v2887_v51  ;;  %v3475_v33 = vor.u32 %v4246_v18, %v3474_v14  ;;  %v4172_v41 = vld [vmem:[#allocation5 + $0x2c4] sm:$0xf]  ;;  %v3188_v42 = vld [vmem:[#allocation5 + $0x2d0] sm:$0xf0]  ;;  %v4799_v49 = vpack.c.bf16 %v181_v37, %v174_v36 }
  0x5f   :  { %1541 = vmatpush.bf16.msrb.mxu0 %v3379_v59  ;;  %3664 = vmatmul.msk.bf16.vlgmr.msrb.gmra.mxu2 %vm1460_vm2, %v4793_v60  ;;  %v4128_v45 = vld [vmem:[#allocation5 + $0x164] sm:$0xf]  ;;  %v3012_v46 = vld [vmem:[#allocation5 + $0x170] sm:$0xf0]  ;;  %v3191_v53 = vor.u32 %v4172_v41, %v3188_v42 }
  0x60   :  { %1592 = vmatpush.bf16.msra.mxu2 %v3079_v52  ;;  %1555 = vmatpush.bf16.msrb.mxu1 %v3507_v61  ;;  %v4204_v47 = vld [vmem:[#allocation5 + $0x3c4] sm:$0xf]  ;;  %v3316_v50 = vld [vmem:[#allocation5 + $0x3d0] sm:$0xf0]  ;;  %v3015_v54 = vor.u32 %v4128_v45, %v3012_v46 }
  0x61   :  { %v4236_v51 = vld [vmem:[#allocation5 + $0x4c4] sm:$0xf]  ;;  %v3444_v52 = vld [vmem:[#allocation5 + $0x4d0] sm:$0xf0]  ;;  %v3319_v57 = vor.u32 %v4204_v47, %v3316_v50  ;;  %v1037_v50 = vunpack.c.h.b16 %v4773_v16 }
  0x62   :  { %1583 = vmatpush.bf16.msrb.mxu3 %v2871_v2  ;;  %v4168_v55 = vld [vmem:[#allocation5 + $0x2a4] sm:$0xf]  ;;  %v3172_v56 = vld [vmem:[#allocation5 + $0x2b0] sm:$0xf0]  ;;  %v3447_v58 = vor.u32 %v4236_v51, %v3444_v52 }
  0x63   :  { %1542 = vmatpush.bf16.msrb.mxu0 %v3363_v11  ;;  %v4124_v59 = vld [vmem:[#allocation5 + $0x144] sm:$0xf]  ;;  %v2996_v61 = vld [vmem:[#allocation5 + $0x150] sm:$0xf0]  ;;  %v3175_v4 = vor.u32 %v4168_v55, %v3172_v56  ;;  %v1249_v16 = vpack.c.b16 %v1037_v50, %v1037_v50  ;;  %v4139_v50 = vld [vmem:[#allocation5 + $0x1b4] sm:$0xf0] }
  0x64   :  { %1593 = vmatpush.bf16.msra.mxu2 %v3063_v3  ;;  %1556 = vmatpush.bf16.msrb.mxu1 %v3491_v15  ;;  %v4200_v0 = vld [vmem:[#allocation5 + $0x3a4] sm:$0xf]  ;;  %v3300_v1 = vld [vmem:[#allocation5 + $0x3b0] sm:$0xf0]  ;;  %v2999_v5 = vor.u32 %v4124_v59, %v2996_v61 }
  0x65   :  { %v4232_v2 = vld [vmem:[#allocation5 + $0x4a4] sm:$0xf]  ;;  %v3428_v3 = vld [vmem:[#allocation5 + $0x4b0] sm:$0xf0]  ;;  %v3303_v9 = vor.u32 %v4200_v0, %v3300_v1 }
  0x66   :  { %1584 = vmatpush.bf16.msrb.mxu3 %v2855_v21  ;;  %v4164_v6 = vld [vmem:[#allocation5 + $0x284] sm:$0xf]  ;;  %v3156_v8 = vld [vmem:[#allocation5 + $0x290] sm:$0xf0]  ;;  %v3431_v10 = vor.u32 %v4232_v2, %v3428_v3 }
  0x67   :  { %1543 = vmatpush.bf16.msrb.mxu0 %v3347_v29  ;;  %v4120_v11 = vld [vmem:[#allocation5 + $0x124] sm:$0xf]  ;;  %v2980_v12 = vld [vmem:[#allocation5 + $0x130] sm:$0xf0]  ;;  %v3159_v19 = vor.u32 %v4164_v6, %v3156_v8 }
  0x68   :  { %1594 = vmatpush.bf16.msra.mxu2 %v3047_v22  ;;  %1557 = vmatpush.bf16.msrb.mxu1 %v3475_v33  ;;  %v4196_v13 = vld [vmem:[#allocation5 + $0x384] sm:$0xf]  ;;  %v3284_v14 = vld [vmem:[#allocation5 + $0x390] sm:$0xf0]  ;;  %v2983_v20 = vor.u32 %v4120_v11, %v2980_v12 }
  0x69   :  { %v4228_v15 = vld [vmem:[#allocation5 + $0x484] sm:$0xf]  ;;  %v3412_v18 = vld [vmem:[#allocation5 + $0x490] sm:$0xf0]  ;;  %v3287_v23 = vor.u32 %v4196_v13, %v3284_v14 }
  0x6a   :  { %1585 = vmatpush.bf16.msrb.mxu3 %v2839_v39  ;;  %1544 = vmatmul.bf16.vlgmr.msrb.gmra.mxu0 %v4797_v48  ;;  %v4160_v21 = vld [vmem:[#allocation5 + $0x264] sm:$0xf]  ;;  %v3140_v22 = vld [vmem:[#allocation5 + $0x270] sm:$0xf0]  ;;  %v3415_v24 = vor.u32 %v4228_v15, %v3412_v18  ;;  %v2954_v15 = vld [vmem:[#allocation5 + $0xe8] sm:$0xf] }
  0x6b   :  { %1606 = vmatpush.bf16.msra.mxu0 %v3207_v34  ;;  %1558 = vmatmul.bf16.vlgmr.msrb.gmra.mxu1 %v4799_v49  ;;  %v4116_v25 = vld [vmem:[#allocation5 + $0x104] sm:$0xf]  ;;  %v2964_v26 = vld [vmem:[#allocation5 + $0x110] sm:$0xf0]  ;;  %v3143_v31 = vor.u32 %v4160_v21, %v3140_v22  ;;  %v4115_v18 = vld [vmem:[#allocation5 + $0xf4] sm:$0xf0] }
  0x6c   :  { %1595 = vmatpush.bf16.msra.mxu2 %v3031_v40  ;;  %1620 = vmatpush.bf16.msra.mxu1 %v3335_v43  ;;  %v4192_v27 = vld [vmem:[#allocation5 + $0x364] sm:$0xf]  ;;  %v3268_v28 = vld [vmem:[#allocation5 + $0x370] sm:$0xf0]  ;;  %v2967_v34 = vor.u32 %v4116_v25, %v2964_v26  ;;  %v4147_v21 = vld [vmem:[#allocation5 + $0x1f4] sm:$0xf0] }
  0x6d   :  { %1586 = vmatmul.bf16.vlgmr.msrb.gmra.mxu3 %v4783_v63  ;;  %v4224_v29 = vld [vmem:[#allocation5 + $0x464] sm:$0xf]  ;;  %v3396_v30 = vld [vmem:[#allocation5 + $0x470] sm:$0xf0]  ;;  %v3271_v37 = vor.u32 %v4192_v27, %v3268_v28  ;;  %v2955_v27 = vor.u32 %v4115_v18, %v2954_v15  ;;  %v4131_v15 = vld [vmem:[#allocation5 + $0x174] sm:$0xf0] }
  0x6e   :  { %1634 = vmatpush.bf16.msra.mxu3 %v3463_v44  ;;  %v4272_v32 = vld [vmem:[#allocation5 + $0x5e4] sm:$0xf]  ;;  %v3588_v33 = vld [vmem:[#allocation5 + $0x5f0] sm:$0xf0]  ;;  %v3399_v39 = vor.u32 %v4224_v29, %v3396_v30  ;;  %v3338_v18 = vld [vmem:[#allocation5 + $0x3e8] sm:$0xf] }
  0x6f   :  { %1607 = vmatpush.bf16.msra.mxu0 %v3191_v53  ;;  %v4156_v35 = vld [vmem:[#allocation5 + $0x244] sm:$0xf]  ;;  %v3124_v36 = vld [vmem:[#allocation5 + $0x250] sm:$0xf0]  ;;  %v3591_v41 = vor.u32 %v4272_v32, %v3588_v33  ;;  %v4111_v32 = vld [vmem:[#allocation5 + $0xd4] sm:$0xf0] }
  0x70   :  { %1596 = vmatpush.bf16.msra.mxu2 %v3015_v54  ;;  %1621 = vmatpush.bf16.msra.mxu1 %v3319_v57  ;;  %v4188_v40 = vld [vmem:[#allocation5 + $0x344] sm:$0xf]  ;;  %v3252_v42 = vld [vmem:[#allocation5 + $0x350] sm:$0xf0]  ;;  %v3127_v45 = vor.u32 %v4156_v35, %v3124_v36  ;;  %v4143_v35 = vld [vmem:[#allocation5 + $0x1d4] sm:$0xf0] }
  0x71   :  { %v4220_v43 = vld [vmem:[#allocation5 + $0x444] sm:$0xf]  ;;  %v3380_v44 = vld [vmem:[#allocation5 + $0x450] sm:$0xf0]  ;;  %v3255_v53 = vor.u32 %v4188_v40, %v3252_v42 }
  0x72   :  { %1635 = vmatpush.bf16.msra.mxu3 %v3447_v58  ;;  %v4268_v46 = vld [vmem:[#allocation5 + $0x5c4] sm:$0xf]  ;;  %v3572_v47 = vld [vmem:[#allocation5 + $0x5d0] sm:$0xf0]  ;;  %v3383_v54 = vor.u32 %v4220_v43, %v3380_v44  ;;  %v2922_v43 = vld [vmem:[#allocation5 + $0xa8] sm:$0xf] }
  0x73   :  { %1608 = vmatpush.bf16.msra.mxu0 %v3175_v4  ;;  %v4152_v51 = vld [vmem:[#allocation5 + $0x224] sm:$0xf]  ;;  %v3108_v52 = vld [vmem:[#allocation5 + $0x230] sm:$0xf0]  ;;  %v3575_v56 = vor.u32 %v4268_v46, %v3572_v47  ;;  %v3050_v47 = vld [vmem:[#allocation5 + $0x1a8] sm:$0xf] }
  0x74   :  { %1597 = vmatpush.bf16.msra.mxu2 %v2999_v5  ;;  %1622 = vmatpush.bf16.msra.mxu1 %v3303_v9  ;;  %v4184_v55 = vld [vmem:[#allocation5 + $0x324] sm:$0xf]  ;;  %v3236_v57 = vld [vmem:[#allocation5 + $0x330] sm:$0xf0]  ;;  %v3111_v61 = vor.u32 %v4152_v51, %v3108_v52 }
  0x75   :  { %v4216_v58 = vld [vmem:[#allocation5 + $0x424] sm:$0xf]  ;;  %v3364_v59 = vld [vmem:[#allocation5 + $0x430] sm:$0xf0]  ;;  %v3239_v4 = vor.u32 %v4184_v55, %v3236_v57  ;;  %v3051_v57 = vor.u32 %v4139_v50, %v3050_v47  ;;  %v2842_v50 = vld [vmem:[#allocation5 + $0x8] sm:$0xf] }
  0x76   :  { %1636 = vmatpush.bf16.msra.mxu3 %v3431_v10  ;;  %v4264_v0 = vld [vmem:[#allocation5 + $0x5a4] sm:$0xf]  ;;  %v3556_v1 = vld [vmem:[#allocation5 + $0x5b0] sm:$0xf0]  ;;  %v3367_v5 = vor.u32 %v4216_v58, %v3364_v59  ;;  %v2906_v58 = vld [vmem:[#allocation5 + $0x88] sm:$0xf] }
  0x77   :  { %1609 = vmatpush.bf16.msra.mxu0 %v3159_v19  ;;  %v4148_v2 = vld [vmem:[#allocation5 + $0x204] sm:$0xf]  ;;  %v3092_v3 = vld [vmem:[#allocation5 + $0x210] sm:$0xf0]  ;;  %v3559_v9 = vor.u32 %v4264_v0, %v3556_v1  ;;  %v1472_v19 = vand.u32 %v4778_v38, %v1249_v16  ;;  %v4103_v59 = vld [vmem:[#allocation5 + $0x94] sm:$0xf0] }
  0x78   :  { %1598 = vmatpush.bf16.msra.mxu2 %v2983_v20  ;;  %1623 = vmatpush.bf16.msra.mxu1 %v3287_v23  ;;  %v4180_v6 = vld [vmem:[#allocation5 + $0x304] sm:$0xf]  ;;  %v3220_v8 = vld [vmem:[#allocation5 + $0x310] sm:$0xf0]  ;;  %v3095_v13 = vor.u32 %v4148_v2, %v3092_v3  ;;  %v3082_v20 = vld [vmem:[#allocation5 + $0x1e8] sm:$0xf] }
  0x79   :  { %v4212_v10 = vld [vmem:[#allocation5 + $0x404] sm:$0xf]  ;;  %v3348_v11 = vld [vmem:[#allocation5 + $0x410] sm:$0xf0]  ;;  %v3223_v22 = vor.u32 %v4180_v6, %v3220_v8  ;;  %v3083_v29 = vor.u32 %v4147_v21, %v3082_v20  ;;  %v3034_v0 = vld [vmem:[#allocation5 + $0x188] sm:$0xf] }
  0x7a   :  { %1637 = vmatpush.bf16.msra.mxu3 %v3415_v24  ;;  %v4260_v12 = vld [vmem:[#allocation5 + $0x584] sm:$0xf]  ;;  %v3540_v14 = vld [vmem:[#allocation5 + $0x590] sm:$0xf0]  ;;  %v3351_v23 = vor.u32 %v4212_v10, %v3348_v11  ;;  %v4135_v1 = vld [vmem:[#allocation5 + $0x194] sm:$0xf0] }
  0x7b   :  { %1610 = vmatpush.bf16.msra.mxu0 %v3143_v31  ;;  %v4288_v24 = vld [vmem:[#allocation5 + $0x664] sm:$0xf]  ;;  %v3652_v25 = vld [vmem:[#allocation5 + $0x670] sm:$0xf0]  ;;  %v3543_v26 = vor.u32 %v4260_v12, %v3540_v14  ;;  %v2938_v31 = vld [vmem:[#allocation5 + $0xc8] sm:$0xf]  ;;  %v3035_v10 = vor.u32 %v4135_v1, %v3034_v0 }
  0x7c   :  { %1599 = vmatpush.bf16.msra.mxu2 %v2967_v34  ;;  %1624 = vmatpush.bf16.msra.mxu1 %v3271_v37  ;;  %v4256_v28 = vld [vmem:[#allocation5 + $0x564] sm:$0xf]  ;;  %v3524_v30 = vld [vmem:[#allocation5 + $0x570] sm:$0xf0]  ;;  %v3655_v33 = vor.u32 %v4288_v24, %v3652_v25  ;;  %v3066_v34 = vld [vmem:[#allocation5 + $0x1c8] sm:$0xf]  ;;  %v2939_v40 = vor.u32 %v4111_v32, %v2938_v31 }
  0x7d   :  { %v4284_v36 = vld [vmem:[#allocation5 + $0x644] sm:$0xf]  ;;  %v3636_v37 = vld [vmem:[#allocation5 + $0x650] sm:$0xf0]  ;;  %v3067_v44 = vor.u32 %v4143_v35, %v3066_v34  ;;  %v3210_v8 = vld [vmem:[#allocation5 + $0x2e8] sm:$0xf] }
  0x7e   :  { %1638 = vmatpush.bf16.msra.mxu3 %v3399_v39  ;;  %v3527_v39 = vor.u32 %v4256_v28, %v3524_v30  ;;  %v3508_v42 = vld [vmem:[#allocation5 + $0x550] sm:$0xf0]  ;;  %v3639_v46 = vor.u32 %v4284_v36, %v3636_v37  ;;  %v4280_v51 = vld [vmem:[#allocation5 + $0x624] sm:$0xf]  ;;  %v2890_v11 = vld [vmem:[#allocation5 + $0x68] sm:$0xf] }
  0x7f   :  { %1611 = vmatpush.bf16.msra.mxu0 %v3127_v45  ;;  %1600 = vmatmul.bf16.vlgmr.msra.gmra.mxu2 %v4790_v17  ;;  %v4107_v45 = vld [vmem:[#allocation5 + $0xb4] sm:$0xf0]  ;;  %v3620_v52 = vld [vmem:[#allocation5 + $0x630] sm:$0xf0]  ;;  %v4248_v55 = vld [vmem:[#allocation5 + $0x524] sm:$0xf] }
  0x80   :  { %1648 = vmatpush.bf16.msrb.mxu2 %v3591_v41  ;;  %1625 = vmatpush.bf16.msra.mxu1 %v3255_v53  ;;  %v4252_v41 = vld [vmem:[#allocation5 + $0x544] sm:$0xf]  ;;  %v3604_v3 = vld [vmem:[#allocation5 + $0x610] sm:$0xf0]  ;;  %v4099_v12 = vld [vmem:[#allocation5 + $0x74] sm:$0xf0] }
  0x81   :  { %v3511_v53 = vor.u32 %v4252_v41, %v3508_v42  ;;  %v4244_v16 = vld [vmem:[#allocation5 + $0x504] sm:$0xf]  ;;  %v3476_v6 = vld [vmem:[#allocation5 + $0x510] sm:$0xf0]  ;;  %v4175_v24 = vld [vmem:[#allocation5 + $0x2d4] sm:$0xf0] }
  0x82   :  { %1639 = vmatpush.bf16.msra.mxu3 %v3383_v54  ;;  %v2923_v54 = vor.u32 %v4107_v45, %v2922_v43  ;;  %v4276_v2 = vld [vmem:[#allocation5 + $0x604] sm:$0xf]  ;;  %v3479_v21 = vor.u32 %v4244_v16, %v3476_v6  ;;  %v4095_v28 = vld [vmem:[#allocation5 + $0x54] sm:$0xf0]  ;;  %v3322_v31 = vld [vmem:[#allocation5 + $0x3c8] sm:$0xf] }
  0x83   :  { %1612 = vmatpush.bf16.msra.mxu0 %v3111_v61  ;;  %v3623_v61 = vor.u32 %v4280_v51, %v3620_v52  ;;  %v3607_v14 = vor.u32 %v4276_v2, %v3604_v3  ;;  %v4127_v30 = vld [vmem:[#allocation5 + $0x154] sm:$0xf0]  ;;  %v3178_v35 = vld [vmem:[#allocation5 + $0x2a8] sm:$0xf] }
  0x84   :  { %1649 = vmatpush.bf16.msrb.mxu2 %v3575_v56  ;;  %1626 = vmatpush.bf16.msra.mxu1 %v3239_v4  ;;  %v3492_v56 = vld [vmem:[#allocation5 + $0x530] sm:$0xf0]  ;;  %v4207_v32 = vld [vmem:[#allocation5 + $0x3d4] sm:$0xf0]  ;;  %v2986_v42 = vld [vmem:[#allocation5 + $0x128] sm:$0xf] }
  0x85   :  { %v3495_v4 = vor.u32 %v4248_v55, %v3492_v56  ;;  %v4171_v36 = vld [vmem:[#allocation5 + $0x2b4] sm:$0xf0]  ;;  %v3162_v51 = vld [vmem:[#allocation5 + $0x288] sm:$0xf] }
  0x86   :  { %1640 = vmatpush.bf16.msra.mxu3 %v3367_v5  ;;  %v2907_v5 = vor.u32 %v4103_v59, %v2906_v58  ;;  %v4091_v41 = vld [vmem:[#allocation5 + $0x34] sm:$0xf0]  ;;  %v2970_v56 = vld [vmem:[#allocation5 + $0x108] sm:$0xf] }
  0x87   :  { %1613 = vmatpush.bf16.msra.mxu0 %v3095_v13  ;;  %v3018_v13 = vld [vmem:[#allocation5 + $0x168] sm:$0xf]  ;;  %v4123_v43 = vld [vmem:[#allocation5 + $0x134] sm:$0xf0] }
  0x88   :  { %1650 = vmatpush.bf16.msrb.mxu2 %v3559_v9  ;;  %1627 = vmatpush.bf16.msra.mxu1 %v3223_v22  ;;  %v4179_v9 = vld [vmem:[#allocation5 + $0x2f4] sm:$0xf0]  ;;  %v2891_v22 = vor.u32 %v4099_v12, %v2890_v11  ;;  %v3019_v25 = vor.u32 %v4131_v15, %v3018_v13  ;;  %v3290_v58 = vld [vmem:[#allocation5 + $0x388] sm:$0xf] }
  0x89   :  { %v3211_v20 = vor.u32 %v4179_v9, %v3210_v8  ;;  %v4203_v45 = vld [vmem:[#allocation5 + $0x3b4] sm:$0xf0]  ;;  %v3594_v16 = vld [vmem:[#allocation5 + $0x5e8] sm:$0xf] }
  0x8a   :  { %1641 = vmatpush.bf16.msra.mxu3 %v3351_v23  ;;  %1614 = vmatmul.bf16.vlgmr.msra.gmra.mxu0 %v4781_v62  ;;  %v3194_v23 = vld [vmem:[#allocation5 + $0x2c8] sm:$0xf]  ;;  %v4167_v52 = vld [vmem:[#allocation5 + $0x294] sm:$0xf0] }
  0x8b   :  { %1665 = vmatpush.bf16.msrb.mxu0 %v1472_v19  ;;  %1628 = vmatmul.bf16.vlgmr.msra.gmra.mxu1 %v4785_v7  ;;  %v4211_v19 = vld [vmem:[#allocation5 + $0x3f4] sm:$0xf0]  ;;  %v3163_v0 = vor.u32 %v4167_v52, %v3162_v51  ;;  %v3274_v11 = vld [vmem:[#allocation5 + $0x368] sm:$0xf] }
  0x8c   :  { %1651 = vmatpush.bf16.msrb.mxu2 %v3543_v26  ;;  %1676 = vmatpush.bf16.msrb.mxu1 %v2955_v27  ;;  %v3339_v26 = vor.u32 %v4211_v19, %v3338_v18  ;;  %v2874_v27 = vld [vmem:[#allocation5 + $0x48] sm:$0xf]  ;;  %v4087_v55 = vld [vmem:[#allocation5 + $0x14] sm:$0xf0] }
  0x8d   :  { %1642 = vmatmul.bf16.vlgmr.msra.gmra.mxu3 %v4797_v48  ;;  %v2875_v34 = vor.u32 %v4095_v28, %v2874_v27  ;;  %v4199_v59 = vld [vmem:[#allocation5 + $0x394] sm:$0xf0]  ;;  %v2843_v3 = vor.u32 %v4087_v55, %v2842_v50  ;;  %v3450_v13 = vld [vmem:[#allocation5 + $0x4c8] sm:$0xf] }
  0x8e   :  { %1690 = vmatpush.bf16.msrb.mxu3 %v3083_v29  ;;  %v3002_v29 = vld [vmem:[#allocation5 + $0x148] sm:$0xf]  ;;  %v4243_v1 = vld [vmem:[#allocation5 + $0x4f4] sm:$0xf0]  ;;  %v3291_v8 = vor.u32 %v4199_v59, %v3290_v58 }
  0x8f   :  { %1666 = vmatpush.bf16.msrb.mxu0 %v3655_v33  ;;  %v3195_v33 = vor.u32 %v4175_v24, %v3194_v23  ;;  %v3003_v37 = vor.u32 %v4127_v30, %v3002_v29  ;;  %v4275_v2 = vld [vmem:[#allocation5 + $0x5f4] sm:$0xf0]  ;;  %v3578_v18 = vld [vmem:[#allocation5 + $0x5c8] sm:$0xf] }
  0x90   :  { %1652 = vmatpush.bf16.msrb.mxu2 %v3527_v39  ;;  %1677 = vmatpush.bf16.msrb.mxu1 %v2939_v40  ;;  %v3323_v39 = vor.u32 %v4207_v32, %v3322_v31  ;;  %v2858_v40 = vld [vmem:[#allocation5 + $0x28] sm:$0xf]  ;;  %v4195_v12 = vld [vmem:[#allocation5 + $0x374] sm:$0xf0] }
  0x91   :  { %v2859_v47 = vor.u32 %v4091_v41, %v2858_v40  ;;  %v4239_v15 = vld [vmem:[#allocation5 + $0x4d4] sm:$0xf0]  ;;  %v4813_v23 = vld [vmem:[#allocation5 + $0x688] sm:$0x33] }
  0x92   :  { %1691 = vmatpush.bf16.msrb.mxu3 %v3067_v44  ;;  %v3306_v44 = vld [vmem:[#allocation5 + $0x3a8] sm:$0xf]  ;;  %v4271_v19 = vld [vmem:[#allocation5 + $0x5d4] sm:$0xf0]  ;;  %v3451_v24 = vor.u32 %v4239_v15, %v3450_v13  ;;  %v4109_v15 = vld [vmem:[#allocation5 + $0xcc] sm:$0xf] }
  0x93   :  { %1667 = vmatpush.bf16.msrb.mxu0 %v3639_v46  ;;  %v3179_v46 = vor.u32 %v4171_v36, %v3178_v35  ;;  %v4191_v27 = vld [vmem:[#allocation5 + $0x354] sm:$0xf0]  ;;  %v3434_v28 = vld [vmem:[#allocation5 + $0x4a8] sm:$0xf]  ;;  %v1038_v35 = vunpack.c.l.b16 %v4813_v23 }
  0x94   :  { %1653 = vmatpush.bf16.msrb.mxu2 %v3511_v53  ;;  %1678 = vmatpush.bf16.msrb.mxu1 %v2923_v54  ;;  %v2987_v53 = vor.u32 %v4123_v43, %v2986_v42  ;;  %v3307_v54 = vor.u32 %v4203_v45, %v3306_v44  ;;  %v4235_v30 = vld [vmem:[#allocation5 + $0x4b4] sm:$0xf0]  ;;  %v3562_v31 = vld [vmem:[#allocation5 + $0x5a8] sm:$0xf] }
  0x95   :  { %v4267_v32 = vld [vmem:[#allocation5 + $0x5b4] sm:$0xf0]  ;;  %v3242_v40 = vld [vmem:[#allocation5 + $0x328] sm:$0xf]  ;;  %v1250_v51 = vpack.c.b16 %v1038_v35, %v1038_v35 }
  0x96   :  { %1692 = vmatpush.bf16.msrb.mxu3 %v3051_v57  ;;  %v4119_v57 = vld [vmem:[#allocation5 + $0x114] sm:$0xf0]  ;;  %v3418_v42 = vld [vmem:[#allocation5 + $0x488] sm:$0xf] }
  0x97   :  { %1668 = vmatpush.bf16.msrb.mxu0 %v3623_v61  ;;  %v3466_v61 = vld [vmem:[#allocation5 + $0x4e8] sm:$0xf]  ;;  %v2971_v6 = vor.u32 %v4119_v57, %v2970_v56  ;;  %v4187_v41 = vld [vmem:[#allocation5 + $0x334] sm:$0xf0] }
  0x98   :  { %1654 = vmatpush.bf16.msrb.mxu2 %v3495_v4  ;;  %1679 = vmatpush.bf16.msrb.mxu1 %v2907_v5  ;;  %v3146_v4 = vld [vmem:[#allocation5 + $0x268] sm:$0xf]  ;;  %v4163_v5 = vld [vmem:[#allocation5 + $0x274] sm:$0xf0]  ;;  %v3467_v9 = vor.u32 %v4243_v1, %v3466_v61  ;;  %v3243_v52 = vor.u32 %v4187_v41, %v3242_v40  ;;  %v1475_v1 = vand.u32 %v4778_v38, %v1250_v51 }
  0x99   :  { %v4231_v44 = vld [vmem:[#allocation5 + $0x494] sm:$0xf0]  ;;  %v3546_v45 = vld [vmem:[#allocation5 + $0x588] sm:$0xf] }
  0x9a   :  { %1693 = vmatpush.bf16.msrb.mxu3 %v3035_v10  ;;  %v3595_v10 = vor.u32 %v4275_v2, %v3594_v16  ;;  %v4151_v50 = vld [vmem:[#allocation5 + $0x214] sm:$0xf0]  ;;  %v3226_v55 = vld [vmem:[#allocation5 + $0x308] sm:$0xf]  ;;  %v4113_v16 = vld [vmem:[#allocation5 + $0xec] sm:$0xf] }
  0x9b   :  { %1669 = vmatpush.bf16.msrb.mxu0 %v3607_v14  ;;  %v3147_v14 = vor.u32 %v4163_v5, %v3146_v4  ;;  %v4183_v56 = vld [vmem:[#allocation5 + $0x314] sm:$0xf0]  ;;  %v3402_v57 = vld [vmem:[#allocation5 + $0x468] sm:$0xf]  ;;  %v2956_v2 = vld [vmem:[#allocation5 + $0xf8] sm:$0xf0] }
  0x9c   :  { %1655 = vmatpush.bf16.msrb.mxu2 %v3479_v21  ;;  %1680 = vmatpush.bf16.msrb.mxu1 %v2891_v22  ;;  %v4159_v21 = vld [vmem:[#allocation5 + $0x254] sm:$0xf0]  ;;  %v3275_v22 = vor.u32 %v4195_v12, %v3274_v11  ;;  %v3530_v61 = vld [vmem:[#allocation5 + $0x568] sm:$0xf] }
  0x9d   :  { %v4227_v59 = vld [vmem:[#allocation5 + $0x474] sm:$0xf0]  ;;  %v3658_v4 = vld [vmem:[#allocation5 + $0x668] sm:$0xf] }
  0x9e   :  { %1694 = vmatpush.bf16.msrb.mxu3 %v3019_v25  ;;  %3665 = vmatmul.msk.bf16.vlgmr.msrb.gmra.mxu0 %vm1460_vm2, %v4793_v60  ;;  %v3579_v25 = vor.u32 %v4271_v19, %v3578_v18  ;;  %v4291_v5 = vld [vmem:[#allocation5 + $0x674] sm:$0xf0]  ;;  %v3514_v12 = vld [vmem:[#allocation5 + $0x548] sm:$0xf]  ;;  %v2940_v18 = vld [vmem:[#allocation5 + $0xd8] sm:$0xf0] }
  0x9f   :  { %1704 = vmatpush.bf16.msra.mxu0 %v3211_v20  ;;  %1656 = vmatmul.bf16.vlgmr.msrb.gmra.mxu2 %v4799_v49  ;;  %v3130_v20 = vld [vmem:[#allocation5 + $0x248] sm:$0xf]  ;;  %v4223_v11 = vld [vmem:[#allocation5 + $0x454] sm:$0xf0] }
  0xa0   :  { %1718 = vmatpush.bf16.msra.mxu2 %v3339_v26  ;;  %1681 = vmatpush.bf16.msrb.mxu1 %v2875_v34  ;;  %v3258_v26 = vld [vmem:[#allocation5 + $0x348] sm:$0xf]  ;;  %v3131_v29 = vor.u32 %v4159_v21, %v3130_v20  ;;  %v4155_v34 = vld [vmem:[#allocation5 + $0x234] sm:$0xf0] }
  0xa1   :  { %v3259_v36 = vor.u32 %v4191_v27, %v3258_v26  ;;  %v4255_v13 = vld [vmem:[#allocation5 + $0x554] sm:$0xf0]  ;;  %v3642_v19 = vld [vmem:[#allocation5 + $0x648] sm:$0xf] }
  0xa2   :  { %1695 = vmatpush.bf16.msrb.mxu3 %v3003_v37  ;;  %v3435_v37 = vor.u32 %v4235_v30, %v3434_v28  ;;  %v4287_v20 = vld [vmem:[#allocation5 + $0x654] sm:$0xf0]  ;;  %v3498_v27 = vld [vmem:[#allocation5 + $0x528] sm:$0xf]  ;;  %v4105_v30 = vld [vmem:[#allocation5 + $0xac] sm:$0xf] }
  0xa3   :  { %1705 = vmatpush.bf16.msra.mxu0 %v3195_v33  ;;  %v3114_v33 = vld [vmem:[#allocation5 + $0x228] sm:$0xf]  ;;  %v4219_v26 = vld [vmem:[#allocation5 + $0x434] sm:$0xf0] }
  0xa4   :  { %1719 = vmatpush.bf16.msra.mxu2 %v3323_v39  ;;  %1682 = vmatpush.bf16.msrb.mxu1 %v2859_v47  ;;  %v3563_v39 = vor.u32 %v4267_v32, %v3562_v31  ;;  %v3115_v43 = vor.u32 %v4155_v34, %v3114_v33  ;;  %v3098_v47 = vld [vmem:[#allocation5 + $0x208] sm:$0xf]  ;;  %v4251_v28 = vld [vmem:[#allocation5 + $0x534] sm:$0xf0]  ;;  %v2924_v31 = vld [vmem:[#allocation5 + $0xb8] sm:$0xf0] }
  0xa5   :  { %v3099_v58 = vor.u32 %v4151_v50, %v3098_v47  ;;  %v3626_v32 = vld [vmem:[#allocation5 + $0x628] sm:$0xf]  ;;  %v4283_v33 = vld [vmem:[#allocation5 + $0x634] sm:$0xf0]  ;;  %v3499_v35 = vor.u32 %v4251_v28, %v3498_v27  ;;  %v2927_v40 = vor.u32 %v4105_v30, %v2924_v31  ;;  %v4177_v47 = vld [vmem:[#allocation5 + $0x2ec] sm:$0xf] }
  0xa6   :  { %1696 = vmatpush.bf16.msrb.mxu3 %v2987_v53  ;;  %v3419_v53 = vor.u32 %v4231_v44, %v3418_v42  ;;  %v4247_v41 = vld [vmem:[#allocation5 + $0x514] sm:$0xf0]  ;;  %v4101_v42 = vld [vmem:[#allocation5 + $0x8c] sm:$0xf]  ;;  %v3627_v44 = vor.u32 %v4283_v33, %v3626_v32  ;;  %v3212_v50 = vld [vmem:[#allocation5 + $0x2f8] sm:$0xf0] }
  0xa7   :  { %1706 = vmatpush.bf16.msra.mxu0 %v3179_v46  ;;  %v4263_v46 = vld [vmem:[#allocation5 + $0x594] sm:$0xf0]  ;;  %v3610_v51 = vld [vmem:[#allocation5 + $0x608] sm:$0xf]  ;;  %v2860_v28 = vld [vmem:[#allocation5 + $0x38] sm:$0xf0] }
  0xa8   :  { %1720 = vmatpush.bf16.msra.mxu2 %v3307_v54  ;;  %1683 = vmatpush.bf16.msrb.mxu1 %v2843_v3  ;;  %v3547_v54 = vor.u32 %v4263_v46, %v3546_v45  ;;  %v3227_v3 = vor.u32 %v4183_v56, %v3226_v55  ;;  %v4145_v45 = vld [vmem:[#allocation5 + $0x1ec] sm:$0xf]  ;;  %v3084_v46 = vld [vmem:[#allocation5 + $0x1f8] sm:$0xf0] }
  0xa9   :  { %v3087_v56 = vor.u32 %v4145_v45, %v3084_v46  ;;  %v3036_v30 = vld [vmem:[#allocation5 + $0x198] sm:$0xf0]  ;;  %v4165_v31 = vld [vmem:[#allocation5 + $0x28c] sm:$0xf] }
  0xaa   :  { %1697 = vmatpush.bf16.msrb.mxu3 %v2971_v6  ;;  %v3403_v6 = vor.u32 %v4227_v59, %v3402_v57  ;;  %v4097_v57 = vld [vmem:[#allocation5 + $0x6c] sm:$0xf]  ;;  %v3340_v59 = vld [vmem:[#allocation5 + $0x3f8] sm:$0xf0] }
  0xab   :  { %1707 = vmatpush.bf16.msra.mxu0 %v3163_v0  ;;  %1684 = vmatmul.bf16.vlgmr.msrb.gmra.mxu1 %v4783_v63  ;;  %v4259_v0 = vld [vmem:[#allocation5 + $0x574] sm:$0xf0]  ;;  %v3164_v32 = vld [vmem:[#allocation5 + $0x298] sm:$0xf0]  ;;  %v4241_v46 = vld [vmem:[#allocation5 + $0x4ec] sm:$0xf] }
  0xac   :  { %1721 = vmatpush.bf16.msra.mxu2 %v3291_v8  ;;  %1732 = vmatpush.bf16.msra.mxu1 %v3467_v9  ;;  %v3531_v8 = vor.u32 %v4259_v0, %v3530_v61  ;;  %v3386_v9 = vld [vmem:[#allocation5 + $0x448] sm:$0xf]  ;;  %v3215_v61 = vor.u32 %v4177_v47, %v3212_v50  ;;  %v3148_v45 = vld [vmem:[#allocation5 + $0x278] sm:$0xf0] }
  0xad   :  { %1698 = vmatmul.bf16.vlgmr.msrb.gmra.mxu3 %v4790_v17  ;;  %v3387_v21 = vor.u32 %v4223_v11, %v3386_v9  ;;  %v4093_v9 = vld [vmem:[#allocation5 + $0x4c] sm:$0xf]  ;;  %v3324_v11 = vld [vmem:[#allocation5 + $0x3d8] sm:$0xf0] }
  0xae   :  { %1746 = vmatpush.bf16.msra.mxu3 %v3595_v10  ;;  %v2959_v10 = vor.u32 %v4113_v16, %v2956_v2  ;;  %v4141_v16 = vld [vmem:[#allocation5 + $0x1cc] sm:$0xf]  ;;  %v3068_v2 = vld [vmem:[#allocation5 + $0x1d8] sm:$0xf0] }
  0xaf   :  { %1708 = vmatpush.bf16.msra.mxu0 %v3147_v14  ;;  %v3659_v14 = vor.u32 %v4291_v5, %v3658_v4  ;;  %v3196_v4 = vld [vmem:[#allocation5 + $0x2d8] sm:$0xf0] }
  0xb0   :  { %1722 = vmatpush.bf16.msra.mxu2 %v3275_v22  ;;  %1733 = vmatpush.bf16.msra.mxu1 %v3451_v24  ;;  %v3515_v22 = vor.u32 %v4255_v13, %v3514_v12  ;;  %v3370_v24 = vld [vmem:[#allocation5 + $0x428] sm:$0xf]  ;;  %v2876_v13 = vld [vmem:[#allocation5 + $0x58] sm:$0xf0] }
  0xb1   :  { %v3371_v34 = vor.u32 %v4219_v26, %v3370_v24  ;;  %v4089_v24 = vld [vmem:[#allocation5 + $0x2c] sm:$0xf]  ;;  %v3308_v26 = vld [vmem:[#allocation5 + $0x3b8] sm:$0xf0] }
  0xb2   :  { %1747 = vmatpush.bf16.msra.mxu3 %v3579_v25  ;;  %v2943_v25 = vor.u32 %v4109_v15, %v2940_v18  ;;  %v3052_v15 = vld [vmem:[#allocation5 + $0x1b8] sm:$0xf0]  ;;  %v4169_v18 = vld [vmem:[#allocation5 + $0x2ac] sm:$0xf] }
  0xb3   :  { %1709 = vmatpush.bf16.msra.mxu0 %v3131_v29  ;;  %v3643_v29 = vor.u32 %v4287_v20, %v3642_v19  ;;  %v3180_v19 = vld [vmem:[#allocation5 + $0x2b8] sm:$0xf0] }
  0xb4   :  { %1723 = vmatpush.bf16.msra.mxu2 %v3259_v36  ;;  %1734 = vmatpush.bf16.msra.mxu1 %v3435_v37  ;;  %v3354_v36 = vld [vmem:[#allocation5 + $0x408] sm:$0xf]  ;;  %v4215_v37 = vld [vmem:[#allocation5 + $0x414] sm:$0xf0]  ;;  %v3183_v27 = vor.u32 %v4169_v18, %v3180_v19  ;;  %v3468_v47 = vld [vmem:[#allocation5 + $0x4f8] sm:$0xf0]  ;;  %v1039_v18 = vunpack.c.h.b16 %v4813_v23 }
  0xb5   :  { %v3100_v23 = vld [vmem:[#allocation5 + $0x218] sm:$0xf0] }
  0xb6   :  { %1748 = vmatpush.bf16.msra.mxu3 %v3563_v39  ;;  %v3482_v39 = vld [vmem:[#allocation5 + $0x508] sm:$0xf] }
  0xb7   :  { %1710 = vmatpush.bf16.msra.mxu0 %v3115_v43  ;;  %v2908_v43 = vld [vmem:[#allocation5 + $0x98] sm:$0xf0] }
  0xb8   :  { %1724 = vmatpush.bf16.msra.mxu2 %v3243_v52  ;;  %1735 = vmatpush.bf16.msra.mxu1 %v3419_v53  ;;  %v4279_v52 = vld [vmem:[#allocation5 + $0x614] sm:$0xf0]  ;;  %v3355_v53 = vor.u32 %v4215_v37, %v3354_v36  ;;  %v2911_v55 = vor.u32 %v4101_v42, %v2908_v43  ;;  %v2844_v37 = vld [vmem:[#allocation5 + $0x18] sm:$0xf0]  ;;  %v4129_v42 = vld [vmem:[#allocation5 + $0x16c] sm:$0xf] }
  0xb9   :  { %v3611_v0 = vor.u32 %v4279_v52, %v3610_v51  ;;  %v3020_v43 = vld [vmem:[#allocation5 + $0x178] sm:$0xf0] }
  0xba   :  { %1749 = vmatpush.bf16.msra.mxu3 %v3547_v54  ;;  %v3483_v54 = vor.u32 %v4247_v41, %v3482_v39  ;;  %v4197_v39 = vld [vmem:[#allocation5 + $0x38c] sm:$0xf]  ;;  %v3167_v41 = vor.u32 %v4165_v31, %v3164_v32  ;;  %v3023_v52 = vor.u32 %v4129_v42, %v3020_v43  ;;  %v3420_v32 = vld [vmem:[#allocation5 + $0x498] sm:$0xf0]  ;;  %v3726_v43 = vld [vmem:[#allocation8 + $0x70] sm:$0xf] }
  0xbb   :  { %1711 = vmatpush.bf16.msra.mxu0 %v3099_v58  ;;  %v4209_v58 = vld [vmem:[#allocation5 + $0x3ec] sm:$0xf] }
  0xbc   :  { %1725 = vmatpush.bf16.msra.mxu2 %v3227_v3  ;;  %1736 = vmatpush.bf16.msra.mxu1 %v3403_v6  ;;  %v4173_v3 = vld [vmem:[#allocation5 + $0x2cc] sm:$0xf]  ;;  %v3343_v5 = vor.u32 %v4209_v58, %v3340_v59  ;;  %v3004_v58 = vld [vmem:[#allocation5 + $0x158] sm:$0xf0] }
  0xbd   :  { %v3199_v12 = vor.u32 %v4173_v3, %v3196_v4  ;;  %v4157_v59 = vld [vmem:[#allocation5 + $0x24c] sm:$0xf]  ;;  %v3260_v4 = vld [vmem:[#allocation5 + $0x358] sm:$0xf0] }
  0xbe   :  { %1750 = vmatpush.bf16.msra.mxu3 %v3531_v8  ;;  %1712 = vmatmul.bf16.vlgmr.msra.gmra.mxu0 %v4781_v62  ;;  %v3071_v8 = vor.u32 %v4141_v16, %v3068_v2  ;;  %v4189_v3 = vld [vmem:[#allocation5 + $0x34c] sm:$0xf] }
  0xbf   :  { %1763 = vmatpush.bf16.msrb.mxu0 %v1475_v1  ;;  %1726 = vmatmul.bf16.vlgmr.msra.gmra.mxu2 %v4785_v7  ;;  %v2892_v1 = vld [vmem:[#allocation5 + $0x78] sm:$0xf0]  ;;  %v3263_v19 = vor.u32 %v4189_v3, %v3260_v4  ;;  %v4229_v31 = vld [vmem:[#allocation5 + $0x48c] sm:$0xf] }
  0xc0   :  { %1774 = vmatpush.bf16.msrb.mxu2 %v2959_v10  ;;  %1737 = vmatpush.bf16.msra.mxu1 %v3387_v21  ;;  %v2895_v6 = vor.u32 %v4097_v57, %v2892_v1  ;;  %v4205_v10 = vld [vmem:[#allocation5 + $0x3cc] sm:$0xf]  ;;  %v2879_v21 = vor.u32 %v4093_v9, %v2876_v13  ;;  %v3452_v1 = vld [vmem:[#allocation5 + $0x4d8] sm:$0xf0]  ;;  %v3423_v42 = vor.u32 %v4229_v31, %v3420_v32  ;;  %v3702_v31 = vld [vmem:[#allocation8 + $0x40] sm:$0xf] }
  0xc1   :  { %v3327_v20 = vor.u32 %v4205_v10, %v3324_v11  ;;  %v4125_v57 = vld [vmem:[#allocation5 + $0x14c] sm:$0xf]  ;;  %v2988_v9 = vld [vmem:[#allocation5 + $0x138] sm:$0xf0] }
  0xc2   :  { %1751 = vmatpush.bf16.msra.mxu3 %v3515_v22  ;;  %v3007_v2 = vor.u32 %v4125_v57, %v3004_v58  ;;  %v4153_v10 = vld [vmem:[#allocation5 + $0x22c] sm:$0xf]  ;;  %v3388_v3 = vld [vmem:[#allocation5 + $0x458] sm:$0xf0] }
  0xc3   :  { %1764 = vmatpush.bf16.msrb.mxu0 %v3659_v14  ;;  %v4137_v14 = vld [vmem:[#allocation5 + $0x1ac] sm:$0xf]  ;;  %v4301_v32 = vld [vmem:[#allocation8 + $0x44] sm:$0xf0] }
  0xc4   :  { %1775 = vmatpush.bf16.msrb.mxu2 %v2943_v25  ;;  %1738 = vmatpush.bf16.msra.mxu1 %v3371_v34  ;;  %v3055_v22 = vor.u32 %v4137_v14, %v3052_v15  ;;  %v4201_v25 = vld [vmem:[#allocation5 + $0x3ac] sm:$0xf]  ;;  %v3436_v14 = vld [vmem:[#allocation5 + $0x4b8] sm:$0xf0] }
  0xc5   :  { %v3311_v33 = vor.u32 %v4201_v25, %v3308_v26  ;;  %v4085_v34 = vld [vmem:[#allocation5 + $0xc] sm:$0xf]  ;;  %v3244_v25 = vld [vmem:[#allocation5 + $0x338] sm:$0xf0] }
  0xc6   :  { %1752 = vmatpush.bf16.msra.mxu3 %v3499_v35  ;;  %v2863_v35 = vor.u32 %v4089_v24, %v2860_v28  ;;  %v2847_v51 = vor.u32 %v4085_v34, %v2844_v37  ;;  %v4233_v13 = vld [vmem:[#allocation5 + $0x4ac] sm:$0xf] }
  0xc7   :  { %1765 = vmatpush.bf16.msrb.mxu0 %v3643_v29  ;;  %v4133_v29 = vld [vmem:[#allocation5 + $0x18c] sm:$0xf] }
  0xc8   :  { %1776 = vmatpush.bf16.msrb.mxu2 %v2927_v40  ;;  %1739 = vmatpush.bf16.msra.mxu1 %v3355_v53  ;;  %v3039_v36 = vor.u32 %v4133_v29, %v3036_v30  ;;  %v3292_v40 = vld [vmem:[#allocation5 + $0x398] sm:$0xf0]  ;;  %v4193_v53 = vld [vmem:[#allocation5 + $0x36c] sm:$0xf] }
  0xc9   :  { %v3295_v50 = vor.u32 %v4197_v39, %v3292_v40  ;;  %v4185_v24 = vld [vmem:[#allocation5 + $0x32c] sm:$0xf]  ;;  %v2972_v29 = vld [vmem:[#allocation5 + $0x118] sm:$0xf0] }
  0xca   :  { %1753 = vmatpush.bf16.msra.mxu3 %v3483_v54  ;;  %v3276_v54 = vld [vmem:[#allocation5 + $0x378] sm:$0xf0]  ;;  %v4117_v28 = vld [vmem:[#allocation5 + $0x10c] sm:$0xf] }
  0xcb   :  { %1766 = vmatpush.bf16.msrb.mxu0 %v3627_v44  ;;  %1740 = vmatmul.bf16.vlgmr.msra.gmra.mxu1 %v4797_v48  ;;  %v4161_v44 = vld [vmem:[#allocation5 + $0x26c] sm:$0xf]  ;;  %v3279_v16 = vor.u32 %v4193_v53, %v3276_v54  ;;  %v4825_v11 = vpop.f32.mrf.mxu0  ;;  %v3228_v39 = vld [vmem:[#allocation5 + $0x318] sm:$0xf0] }
  0xcc   :  { %1777 = vmatpush.bf16.msrb.mxu2 %v2911_v55  ;;  %1788 = vmatpush.bf16.msrb.mxu1 %v3087_v56  ;;  %v3151_v55 = vor.u32 %v4161_v44, %v3148_v45  ;;  %v3471_v56 = vor.u32 %v4241_v46, %v3468_v47  ;;  %v4149_v30 = vld [vmem:[#allocation5 + $0x20c] sm:$0xf]  ;;  %v3580_v53 = vld [vmem:[#allocation5 + $0x5d8] sm:$0xf0] }
  0xcd   :  { %1754 = vmatmul.bf16.vlgmr.msra.gmra.mxu3 %v4799_v49  ;;  %v4273_v34 = vld [vmem:[#allocation5 + $0x5ec] sm:$0xf] }
  0xce   :  { %1802 = vmatpush.bf16.msrb.mxu3 %v3215_v61  ;;  %v3132_v61 = vld [vmem:[#allocation5 + $0x258] sm:$0xf0]  ;;  %v4181_v37 = vld [vmem:[#allocation5 + $0x30c] sm:$0xf] }
  0xcf   :  { %1767 = vmatpush.bf16.msrb.mxu0 %v3611_v0  ;;  %v4237_v0 = vld [vmem:[#allocation5 + $0x4cc] sm:$0xf]  ;;  %v4827_v15 = vpop.f32.mrf.mxu1 }
  0xd0   :  { %1778 = vmatpush.bf16.msrb.mxu2 %v2895_v6  ;;  %1789 = vmatpush.bf16.msrb.mxu1 %v3071_v8  ;;  %v3455_v6 = vor.u32 %v4237_v0, %v3452_v1  ;;  %v4121_v8 = vld [vmem:[#allocation5 + $0x12c] sm:$0xf]  ;;  %v4305_v0 = vld [vmem:[#allocation8 + $0x64] sm:$0xf0] }
  0xd1   :  { %v4307_v44 = vld [vmem:[#allocation8 + $0x74] sm:$0xf0] }
  0xd2   :  { %1803 = vmatpush.bf16.msrb.mxu3 %v3199_v12  ;;  %3666 = vmatmul.msk.bf16.vlgmr.msrb.gmra.mxu0 %vm1460_vm2, %v4793_v60  ;;  %v3116_v12 = vld [vmem:[#allocation5 + $0x238] sm:$0xf0]  ;;  %v4225_v47 = vld [vmem:[#allocation5 + $0x46c] sm:$0xf]  ;;  %v3727_v58 = vor.u32 %v4307_v44, %v3726_v43  ;;  %v3703_v43 = vor.u32 %v4301_v32, %v3702_v31  ;;  %v3790_v44 = vld [vmem:[#allocation8 + $0xf0] sm:$0xf] }
  0xd3   :  { %1816 = vmatpush.bf16.msra.mxu0 %v3343_v5  ;;  %v3135_v5 = vor.u32 %v4157_v59, %v3132_v61  ;;  %v3119_v26 = vor.u32 %v4153_v10, %v3116_v12  ;;  %v4289_v54 = vld [vmem:[#allocation5 + $0x66c] sm:$0xf]  ;;  %v3718_v61 = vld [vmem:[#allocation8 + $0x60] sm:$0xf]  ;;  %v3728_v31 = vld [vmem:[#allocation8 + $0x78] sm:$0xf0] }
  0xd4   :  { %1779 = vmatpush.bf16.msrb.mxu2 %v2879_v21  ;;  %1790 = vmatpush.bf16.msrb.mxu1 %v3055_v22  ;;  %v2991_v21 = vor.u32 %v4121_v8, %v2988_v9  ;;  %v4833_v22 = vpop.f32.mrf.mxu2  ;;  %v4265_v4 = vld [vmem:[#allocation5 + $0x5ac] sm:$0xf]  ;;  %v3644_v9 = vld [vmem:[#allocation5 + $0x658] sm:$0xf0]  ;;  %v1531_v10 = vpop.f32.mrf.mxu3  ;;  %v3719_v12 = vor.u32 %v4305_v0, %v3718_v61 }
  0xd5   :  { %v4285_v8 = vld [vmem:[#allocation5 + $0x64c] sm:$0xf]  ;;  %v4321_v61 = vld [vmem:[#allocation8 + $0xe4] sm:$0xf0] }
  0xd6   :  { %1804 = vmatpush.bf16.msrb.mxu3 %v3183_v27  ;;  %v3439_v27 = vor.u32 %v4233_v13, %v3436_v14 }
  0xd7   :  { %1817 = vmatpush.bf16.msra.mxu0 %v3327_v20  ;;  %v4831_v20 = vld [vmem:[#allocation7] sm:$0xf]  ;;  %v1505_v57 = vpop.f32.mrf.mxu1 }
  0xd8   :  { %1780 = vmatpush.bf16.msrb.mxu2 %v2863_v35  ;;  %1791 = vmatpush.bf16.msrb.mxu1 %v3039_v36  ;;  %v3596_v35 = vld [vmem:[#allocation5 + $0x5f8] sm:$0xf0]  ;;  %v2975_v36 = vor.u32 %v4117_v28, %v2972_v29  ;;  %v402_v40 = vperm.slane %v4831_v20, 0 }
  0xd9   :  { %v3599_v45 = vor.u32 %v4273_v34, %v3596_v35  ;;  %v3628_v28 = vld [vmem:[#allocation5 + $0x638] sm:$0xf0] }
  0xda   :  { %1805 = vmatpush.bf16.msrb.mxu3 %v3167_v41  ;;  %v3103_v41 = vor.u32 %v4149_v30, %v3100_v23 }
  0xdb   :  { %1818 = vmatpush.bf16.msra.mxu0 %v3311_v33  ;;  %v1251_v33 = vpack.c.b16 %v1039_v18, %v1039_v18  ;;  %v3710_v18 = vld [vmem:[#allocation8 + $0x50] sm:$0xf] }
  0xdc   :  { %1781 = vmatpush.bf16.msrb.mxu2 %v2847_v51  ;;  %1792 = vmatpush.bf16.msrb.mxu1 %v3023_v52  ;;  %v4269_v51 = vld [vmem:[#allocation5 + $0x5cc] sm:$0xf]  ;;  %v3231_v52 = vor.u32 %v4181_v37, %v3228_v39  ;;  %v3532_v39 = vld [vmem:[#allocation5 + $0x578] sm:$0xf0] }
  0xdd   :  { %v1478_v46 = vand.u32 %v4778_v38, %v1251_v33  ;;  %v3583_v38 = vor.u32 %v4269_v51, %v3580_v53  ;;  %v4257_v37 = vld [vmem:[#allocation5 + $0x56c] sm:$0xf] }
  0xde   :  { %1806 = vmatpush.bf16.msrb.mxu3 %v3151_v55  ;;  %v3660_v55 = vld [vmem:[#allocation5 + $0x678] sm:$0xf0]  ;;  %v4299_v51 = vld [vmem:[#allocation8 + $0x34] sm:$0xf0]  ;;  %v3535_v53 = vor.u32 %v4257_v37, %v3532_v39  ;;  %v4304_v37 = vld [vmem:[#allocation8 + $0x64] sm:$0xf] }
  0xdf   :  { %1819 = vmatpush.bf16.msra.mxu0 %v3295_v50  ;;  %1782 = vmatmul.bf16.vlgmr.msrb.gmra.mxu2 %v4783_v63  ;;  %v3247_v63 = vor.u32 %v4185_v24, %v3244_v25  ;;  %v3404_v50 = vld [vmem:[#allocation5 + $0x478] sm:$0xf0]  ;;  %v3663_v1 = vor.u32 %v4289_v54, %v3660_v55  ;;  %v4217_v24 = vld [vmem:[#allocation5 + $0x42c] sm:$0xf] }
  0xe0   :  { %1830 = vmatpush.bf16.msra.mxu2 %v3471_v56  ;;  %1793 = vmatpush.bf16.msrb.mxu1 %v3007_v2  ;;  %v1491_v56 = vpop.f32.mrf.mxu0  ;;  %v3407_v59 = vor.u32 %v4225_v47, %v3404_v50  ;;  %v4221_v2 = vld [vmem:[#allocation5 + $0x44c] sm:$0xf]  ;;  %v3372_v25 = vld [vmem:[#allocation5 + $0x438] sm:$0xf0]  ;;  %v3694_v50 = vld [vmem:[#allocation8 + $0x30] sm:$0xf] }
  0xe1   :  { %v1492_v13 = vadd.f32 %v1491_v56, %v402_v40  ;;  %v3391_v14 = vor.u32 %v4221_v2, %v3388_v3  ;;  %v3375_v23 = vor.u32 %v4217_v24, %v3372_v25  ;;  %v4253_v55 = vld [vmem:[#allocation5 + $0x54c] sm:$0xf]  ;;  %v3516_v56 = vld [vmem:[#allocation5 + $0x558] sm:$0xf0] }
  0xe2   :  { %1807 = vmatpush.bf16.msrb.mxu3 %v3135_v5  ;;  %v1490_v5 = vadd.f32 %v4825_v11, %v402_v40  ;;  %v3647_v11 = vor.u32 %v4285_v8, %v3644_v9  ;;  %v4277_v40 = vld [vmem:[#allocation5 + $0x60c] sm:$0xf]  ;;  %v3519_v2 = vor.u32 %v4253_v55, %v3516_v56  ;;  %v3500_v8 = vld [vmem:[#allocation5 + $0x538] sm:$0xf0]  ;;  %v3734_v56 = vld [vmem:[#allocation8 + $0x80] sm:$0xf] }
  0xe3   :  { %1820 = vmatpush.bf16.msra.mxu0 %v3279_v16  ;;  %v1519_v16 = vpop.f32.mrf.mxu2  ;;  %v1506_v30 = vadd.f32 %v1505_v57, %v1492_v13  ;;  %v4319_v13 = vld [vmem:[#allocation8 + $0xd4] sm:$0xf0] }
  0xe4   :  { %1831 = vmatpush.bf16.msra.mxu2 %v3455_v6  ;;  %1794 = vmatpush.bf16.msrb.mxu1 %v2991_v21  ;;  %v3564_v6 = vld [vmem:[#allocation5 + $0x5b8] sm:$0xf0]  ;;  %v4245_v25 = vld [vmem:[#allocation5 + $0x50c] sm:$0xf] }
  0xe5   :  { %v3567_v21 = vor.u32 %v4265_v4, %v3564_v6  ;;  %v4249_v6 = vld [vmem:[#allocation5 + $0x52c] sm:$0xf] }
  0xe6   :  { %1808 = vmatpush.bf16.msrb.mxu3 %v3119_v26  ;;  %v1504_v26 = vadd.f32 %v4827_v15, %v1490_v5  ;;  %v3356_v15 = vld [vmem:[#allocation5 + $0x418] sm:$0xf0] }
  0xe7   :  { %1821 = vmatpush.bf16.msra.mxu0 %v3263_v19  ;;  %v4303_v19 = vld [vmem:[#allocation8 + $0x54] sm:$0xf0] }
  0xe8   :  { %1832 = vmatpush.bf16.msra.mxu2 %v3439_v27  ;;  %1795 = vmatpush.bf16.msrb.mxu1 %v2975_v36  ;;  %v3548_v27 = vld [vmem:[#allocation5 + $0x598] sm:$0xf0]  ;;  %v3711_v29 = vor.u32 %v4303_v19, %v3710_v18  ;;  %v1545_v33 = vpop.f32.mrf.mxu0  ;;  %v1559_v35 = vpop.f32.mrf.mxu1  ;;  %v4213_v36 = vld [vmem:[#allocation5 + $0x40c] sm:$0xf]  ;;  %v3678_v18 = vld [vmem:[#allocation8 + $0x10] sm:$0xf] }
  0xe9   :  { %v3359_v47 = vor.u32 %v4213_v36, %v3356_v15  ;;  %v4295_v19 = vld [vmem:[#allocation8 + $0x14] sm:$0xf0] }
  0xea   :  { %1809 = vmatpush.bf16.msrb.mxu3 %v3103_v41  ;;  %v3612_v41 = vld [vmem:[#allocation5 + $0x618] sm:$0xf0] }
  0xeb   :  { %1822 = vmatpush.bf16.msra.mxu0 %v3247_v63  ;;  %1796 = vmatmul.bf16.vlgmr.msrb.gmra.mxu1 %v4790_v17  ;;  %v4261_v17 = vld [vmem:[#allocation5 + $0x58c] sm:$0xf]  ;;  %v3615_v54 = vor.u32 %v4277_v40, %v3612_v41  ;;  %v3750_v41 = vld [vmem:[#allocation8 + $0xa0] sm:$0xf] }
  0xec   :  { %1833 = vmatpush.bf16.msra.mxu2 %v3423_v42  ;;  %1844 = vmatpush.bf16.msra.mxu1 %v3599_v45  ;;  %v3551_v63 = vor.u32 %v4261_v17, %v3548_v27  ;;  %v4843_v42 = vpop.f32.mrf.mxu2  ;;  %v4323_v45 = vld [vmem:[#allocation8 + $0xf4] sm:$0xf0]  ;;  %v3484_v17 = vld [vmem:[#allocation5 + $0x518] sm:$0xf0]  ;;  %v3766_v27 = vld [vmem:[#allocation8 + $0xc0] sm:$0xf] }
  0xed   :  { %1810 = vmatmul.bf16.vlgmr.msrb.gmra.mxu3 %v4781_v62  ;;  %v4281_v62 = vld [vmem:[#allocation5 + $0x62c] sm:$0xf]  ;;  %v3791_v57 = vor.u32 %v4323_v45, %v3790_v44  ;;  %v4302_v45 = vld [vmem:[#allocation8 + $0x54] sm:$0xf] }
  0xee   :  { %1861 = vmatpush.bf16.msra.mxu3 %v1478_v46  ;;  %v3631_v34 = vor.u32 %v4281_v62, %v3628_v28  ;;  %v1520_v46 = vadd.f32 %v1519_v16, %v1506_v30  ;;  %v4317_v62 = vld [vmem:[#allocation8 + $0xc4] sm:$0xf0] }
  0xef   :  { %1823 = vmatpush.bf16.msra.mxu0 %v3231_v52  ;;  %v1533_v52 = vpop.f32.mrf.mxu3  ;;  %v4293_v30 = vld [vmem:[#allocation8 + $0x4] sm:$0xf0] }
  0xf0   :  { %1834 = vmatpush.bf16.msra.mxu2 %v3407_v59  ;;  %1845 = vmatpush.bf16.msra.mxu1 %v3583_v38  ;;  %v3782_v59 = vld [vmem:[#allocation8 + $0xe0] sm:$0xf]  ;;  %v1534_v0 = vadd.f32 %v1533_v52, %v1520_v46  ;;  %v1547_v16 = vpop.f32.mrf.mxu0  ;;  %v1561_v3 = vpop.f32.mrf.mxu1  ;;  %v3712_v46 = vld [vmem:[#allocation8 + $0x58] sm:$0xf0] }
  0xf1   :  { %v3686_v38 = vld [vmem:[#allocation8 + $0x20] sm:$0xf]  ;;  %v3783_v9 = vor.u32 %v4321_v61, %v3782_v59  ;;  %v4322_v59 = vld [vmem:[#allocation8 + $0xf4] sm:$0xf]  ;;  %v3792_v61 = vld [vmem:[#allocation8 + $0xf8] sm:$0xf0] }
  0xf2   :  { %1862 = vmatpush.bf16.msra.mxu3 %v3663_v1  ;;  %1824 = vmatmul.bf16.vlgmr.msra.gmra.mxu0 %v4785_v7  ;;  %v1518_v7 = vadd.f32 %v4833_v22, %v1504_v26  ;;  %v4297_v1 = vld [vmem:[#allocation8 + $0x24] sm:$0xf0]  ;;  %v1548_v5 = vadd.f32 %v1547_v16, %v1534_v0  ;;  %v4298_v0 = vld [vmem:[#allocation8 + $0x34] sm:$0xf] }
  0xf3   :  { %2274 = vmatpush.bf16.msrb.mxu0 %v3727_v58  ;;  %v3695_v58 = vor.u32 %v4299_v51, %v3694_v50  ;;  %v3742_v50 = vld [vmem:[#allocation8 + $0x90] sm:$0xf]  ;;  %v4311_v51 = vld [vmem:[#allocation8 + $0x94] sm:$0xf0] }
  0xf4   :  { %1835 = vmatpush.bf16.msra.mxu2 %v3391_v14  ;;  %1846 = vmatpush.bf16.msra.mxu1 %v3567_v21  ;;  %v1532_v22 = vadd.f32 %v1531_v10, %v1518_v7  ;;  %v3687_v10 = vor.u32 %v4297_v1, %v3686_v38  ;;  %v1562_v14 = vadd.f32 %v1561_v3, %v1548_v5  ;;  %v1575_v21 = vpop.f32.mrf.mxu2  ;;  %v3720_v7 = vld [vmem:[#allocation8 + $0x68] sm:$0xf0]  ;;  %v3696_v38 = vld [vmem:[#allocation8 + $0x38] sm:$0xf0]  ;;  %v4339_v5 = vld [vmem:[#allocation8 + $0x174] sm:$0xf0] }
  0xf5   :  { %v3743_v55 = vor.u32 %v4311_v51, %v3742_v50  ;;  %v3795_v3 = vor.u32 %v4322_v59, %v3792_v61  ;;  %v3760_v50 = vld [vmem:[#allocation8 + $0xb8] sm:$0xf0] }
  0xf6   :  { %1863 = vmatpush.bf16.msra.mxu3 %v3647_v11  ;;  %v1546_v4 = vadd.f32 %v1545_v33, %v1532_v22  ;;  %v3503_v11 = vor.u32 %v4249_v6, %v3500_v8  ;;  %v1576_v28 = vadd.f32 %v1575_v21, %v1562_v14  ;;  %v3767_v33 = vor.u32 %v4317_v62, %v3766_v27  ;;  %v3704_v22 = vld [vmem:[#allocation8 + $0x48] sm:$0xf0]  ;;  %v4320_v8 = vld [vmem:[#allocation8 + $0xe4] sm:$0xf]  ;;  %v3846_v21 = vld [vmem:[#allocation8 + $0x160] sm:$0xf] }
  0xf7   :  { %2275 = vmatpush.bf16.msrb.mxu0 %v3719_v12  ;;  %v3774_v12 = vld [vmem:[#allocation8 + $0xd0] sm:$0xf]  ;;  %v1587_v52 = vpop.f32.mrf.mxu3  ;;  %v3699_v6 = vor.u32 %v4298_v0, %v3696_v38  ;;  %v4294_v27 = vld [vmem:[#allocation8 + $0x14] sm:$0xf]  ;;  %v3680_v62 = vld [vmem:[#allocation8 + $0x18] sm:$0xf0] }
  0xf8   :  { %1836 = vmatpush.bf16.msra.mxu2 %v3375_v23  ;;  %1847 = vmatpush.bf16.msra.mxu1 %v3551_v63  ;;  %v1560_v24 = vadd.f32 %v1559_v35, %v1546_v4  ;;  %v3775_v26 = vor.u32 %v4319_v13, %v3774_v12  ;;  %v4306_v23 = vld [vmem:[#allocation8 + $0x74] sm:$0xf]  ;;  %v4315_v35 = vld [vmem:[#allocation8 + $0xb4] sm:$0xf0]  ;;  %v1876_v36 = vmax.f32 %v1576_v28, 0.0 }
  0xf9   :  { %v3731_v15 = vor.u32 %v4306_v23, %v3728_v31  ;;  %v3854_v4 = vld [vmem:[#allocation8 + $0x170] sm:$0xf]  ;;  %v4296_v12 = vld [vmem:[#allocation8 + $0x24] sm:$0xf]  ;;  %v3688_v13 = vld [vmem:[#allocation8 + $0x28] sm:$0xf0] }
  0xfa   :  { %1864 = vmatpush.bf16.msra.mxu3 %v3631_v34  ;;  %v1574_v32 = vadd.f32 %v4843_v42, %v1560_v24  ;;  %v3758_v34 = vld [vmem:[#allocation8 + $0xb0] sm:$0xf]  ;;  %v3723_v42 = vor.u32 %v4304_v37, %v3720_v7  ;;  %v3691_v24 = vor.u32 %v4296_v12, %v3688_v13  ;;  %v4335_v28 = vld [vmem:[#allocation8 + $0x154] sm:$0xf0]  ;;  %v3830_v31 = vld [vmem:[#allocation8 + $0x140] sm:$0xf] }
  0xfb   :  { %2276 = vmatpush.bf16.msrb.mxu0 %v3711_v29  ;;  %v3670_v29 = vld [vmem:[#allocation8] sm:$0xf]  ;;  %v3759_v40 = vor.u32 %v4315_v35, %v3758_v34  ;;  %v3683_v34 = vor.u32 %v4294_v27, %v3680_v62  ;;  %v4316_v35 = vld [vmem:[#allocation8 + $0xc4] sm:$0xf]  ;;  %v3672_v7 = vld [vmem:[#allocation8 + $0x8] sm:$0xf0] }
  0xfc   :  { %1837 = vmatpush.bf16.msra.mxu2 %v3359_v47  ;;  %1848 = vmatpush.bf16.msra.mxu1 %v3535_v53  ;;  %v3671_v63 = vor.u32 %v4293_v30, %v3670_v29  ;;  %v1872_v39 = vmax.f32 %v1574_v32, 0.0  ;;  %v3715_v53 = vor.u32 %v4302_v45, %v3712_v46  ;;  %v4333_v32 = vld [vmem:[#allocation8 + $0x144] sm:$0xf0]  ;;  %v4292_v37 = vld [vmem:[#allocation8 + $0x4] sm:$0xf] }
  0xfd   :  { %v3675_v46 = vor.u32 %v4292_v37, %v3672_v7  ;;  %v3814_v0 = vld [vmem:[#allocation8 + $0x120] sm:$0xf]  ;;  %v4329_v38 = vld [vmem:[#allocation8 + $0x124] sm:$0xf0]  ;;  %v3736_v12 = vld [vmem:[#allocation8 + $0x88] sm:$0xf0] }
  0xfe   :  { %1865 = vmatpush.bf16.msra.mxu3 %v3615_v54  ;;  %v4849_v44 = vpack.c.bf16 %v1876_v36, %v1872_v39  ;;  %v4300_v54 = vld [vmem:[#allocation8 + $0x44] sm:$0xf]  ;;  %v3768_v36 = vld [vmem:[#allocation8 + $0xc8] sm:$0xf0]  ;;  %v3831_v39 = vor.u32 %v4333_v32, %v3830_v31  ;;  %v404_v7 = vperm.slane %v4831_v20, 2 }
  0xff   :  { %2277 = vmatpush.bf16.msrb.mxu0 %v3703_v43  ;;  %1838 = vmatmul.bf16.vlgmr.msra.gmra.mxu2 %v4797_v48  ;;  %v3679_v48 = vor.u32 %v4295_v19, %v3678_v18  ;;  %v4313_v43 = vld [vmem:[#allocation8 + $0xa4] sm:$0xf0]  ;;  %v1589_v14 = vpop.f32.mrf.mxu3  ;;  %v3832_v37 = vld [vmem:[#allocation8 + $0x148] sm:$0xf0] }
 0x100   :  { %2288 = vmatpush.bf16.msrb.mxu2 %v3791_v57  ;;  %1849 = vmatpush.bf16.msra.mxu1 %v3519_v2  ;;  %v3751_v47 = vor.u32 %v4313_v43, %v3750_v41  ;;  %v4309_v57 = vld [vmem:[#allocation8 + $0x84] sm:$0xf0]  ;;  %v403_v2 = vperm.slane %v4831_v20, 1  ;;  %v3771_v41 = vor.u32 %v4316_v35, %v3768_v36  ;;  %v3822_v43 = vld [vmem:[#allocation8 + $0x130] sm:$0xf] }
 0x101   :  { %3667 = vmatmul.msk.bf16.vlgmr.msra.gmra.mxu3 %vm1460_vm2, %v4793_v60  ;;  %v3487_v60 = vor.u32 %v4245_v25, %v3484_v17  ;;  %v3735_v16 = vor.u32 %v4309_v57, %v3734_v56  ;;  %v4318_v25 = vld [vmem:[#allocation8 + $0xd4] sm:$0xf]  ;;  %v3776_v17 = vld [vmem:[#allocation8 + $0xd8] sm:$0xf0]  ;;  %v3752_v56 = vld [vmem:[#allocation8 + $0xa8] sm:$0xf0] }
 0x102   :  { %v1601_v1 = vpop.f32.mrf.mxu2  ;;  %v1588_v18 = vadd.f32 %v1587_v52, %v403_v2  ;;  %v3779_v23 = vor.u32 %v4318_v25, %v3776_v17  ;;  %v4325_v25 = vld [vmem:[#allocation8 + $0x104] sm:$0xf0] }
 0x103   :  { %2278 = vmatpush.bf16.msrb.mxu0 %v3695_v58 }
 0x104   :  { %2289 = vmatpush.bf16.msrb.mxu2 %v3783_v9  ;;  %1850 = vmatpush.bf16.msra.mxu1 %v3503_v11  ;;  %v3784_v9 = vld [vmem:[#allocation8 + $0xe8] sm:$0xf0]  ;;  %v4337_v11 = vld [vmem:[#allocation8 + $0x164] sm:$0xf0] }
 0x105   :  { %v3787_v19 = vor.u32 %v4320_v8, %v3784_v9  ;;  %v3806_v8 = vld [vmem:[#allocation8 + $0x110] sm:$0xf]  ;;  %v4327_v9 = vld [vmem:[#allocation8 + $0x114] sm:$0xf0] }
 0x106   :  { %v3807_v13 = vor.u32 %v4327_v9, %v3806_v8  ;;  %v3902_v9 = vld [vmem:[#allocation8 + $0x1d0] sm:$0xf] }
 0x107   :  { %2279 = vmatpush.bf16.msrb.mxu0 %v3687_v10  ;;  %v1615_v58 = vpop.f32.mrf.mxu0  ;;  %v3855_v10 = vor.u32 %v4339_v5, %v3854_v4 }
 0x108   :  { %2290 = vmatpush.bf16.msrb.mxu2 %v3775_v26  ;;  %1851 = vmatpush.bf16.msra.mxu1 %v3487_v60  ;;  %v3847_v26 = vor.u32 %v4337_v11, %v3846_v21  ;;  %v1602_v60 = vadd.f32 %v1601_v1, %v1588_v18  ;;  %v4310_v1 = vld [vmem:[#allocation8 + $0x94] sm:$0xf] }
 0x109   :  { %2302 = vmatpush.bf16.msrb.mxu3 %v3855_v10  ;;  %v4308_v10 = vld [vmem:[#allocation8 + $0x84] sm:$0xf] }
 0x10a   :  { %v3739_v11 = vor.u32 %v4308_v10, %v3736_v12  ;;  %v4351_v10 = vld [vmem:[#allocation8 + $0x1d4] sm:$0xf0] }
 0x10b   :  { %2280 = vmatpush.bf16.msrb.mxu0 %v3679_v48  ;;  %1852 = vmatmul.bf16.vlgmr.msra.gmra.mxu1 %v4799_v49  ;;  %v3707_v49 = vor.u32 %v4300_v54, %v3704_v22  ;;  %v3838_v48 = vld [vmem:[#allocation8 + $0x150] sm:$0xf] }
 0x10c   :  { %2291 = vmatpush.bf16.msrb.mxu2 %v3767_v33  ;;  %v3839_v30 = vor.u32 %v4335_v28, %v3838_v48  ;;  %v1629_v33 = vpop.f32.mrf.mxu1  ;;  %v3856_v48 = vld [vmem:[#allocation8 + $0x178] sm:$0xf0] }
 0x10d   :  { %2303 = vmatpush.bf16.msrb.mxu3 %v3847_v26  ;;  %v4338_v26 = vld [vmem:[#allocation8 + $0x174] sm:$0xf] }
 0x10e   :  { %v3859_v62 = vor.u32 %v4338_v26, %v3856_v48  ;;  %v3886_v48 = vld [vmem:[#allocation8 + $0x1b0] sm:$0xf] }
 0x10f   :  { %2281 = vmatpush.bf16.msrb.mxu0 %v3671_v63  ;;  %v1617_v29 = vpop.f32.mrf.mxu0  ;;  %v1603_v63 = vpop.f32.mrf.mxu2 }
 0x110   :  { %2292 = vmatpush.bf16.msrb.mxu2 %v3759_v40  ;;  %v1616_v40 = vadd.f32 %v1615_v58, %v1602_v60  ;;  %v1643_v45 = vpop.f32.mrf.mxu3  ;;  %v3848_v60 = vld [vmem:[#allocation8 + $0x168] sm:$0xf0] }
 0x111   :  { %2304 = vmatpush.bf16.msrb.mxu3 %v3839_v30  ;;  %v4336_v30 = vld [vmem:[#allocation8 + $0x164] sm:$0xf] }
 0x112   :  { %2282 = vmatmul.bf16.vlgmr.msrb.gmra.mxu0 %v4849_v44  ;;  %v3851_v31 = vor.u32 %v4336_v30, %v3848_v60 }
 0x113   :  { %2330 = vmatpush.bf16.msra.mxu0 %v3731_v15  ;;  %v1590_v15 = vadd.f32 %v1589_v14, %v403_v2  ;;  %v3815_v2 = vor.u32 %v4329_v38, %v3814_v0 }
 0x114   :  { %2293 = vmatpush.bf16.msrb.mxu2 %v3751_v47  ;;  %v4314_v47 = vld [vmem:[#allocation8 + $0xb4] sm:$0xf] }
 0x115   :  { %v1604_v51 = vadd.f32 %v1603_v63, %v1590_v15  ;;  %2305 = vmatpush.bf16.msrb.mxu3 %v3831_v39  ;;  %v3763_v54 = vor.u32 %v4314_v47, %v3760_v50  ;;  %v3840_v63 = vld [vmem:[#allocation8 + $0x158] sm:$0xf0]  ;;  %v4332_v15 = vld [vmem:[#allocation8 + $0x144] sm:$0xf]  ;;  %v3816_v47 = vld [vmem:[#allocation8 + $0x128] sm:$0xf0] }
 0x116   :  { %v3835_v39 = vor.u32 %v4332_v15, %v3832_v37  ;;  %v3918_v50 = vld [vmem:[#allocation8 + $0x1f0] sm:$0xf]  ;;  %v4343_v15 = vld [vmem:[#allocation8 + $0x194] sm:$0xf0] }
 0x117   :  { %2331 = vmatpush.bf16.msra.mxu0 %v3723_v42  ;;  %v4331_v42 = vld [vmem:[#allocation8 + $0x134] sm:$0xf0]  ;;  %v1618_v57 = vadd.f32 %v1617_v29, %v1604_v51 }
 0x118   :  { %2294 = vmatpush.bf16.msrb.mxu2 %v3743_v55  ;;  %v3823_v52 = vor.u32 %v4331_v42, %v3822_v43  ;;  %v4312_v55 = vld [vmem:[#allocation8 + $0xa4] sm:$0xf]  ;;  %v1645_v4 = vpop.f32.mrf.mxu3  ;;  %v3824_v43 = vld [vmem:[#allocation8 + $0x138] sm:$0xf0]  ;;  %v4355_v51 = vld [vmem:[#allocation8 + $0x1f4] sm:$0xf0] }
 0x119   :  { %v3755_v61 = vor.u32 %v4312_v55, %v3752_v56  ;;  %v3808_v55 = vld [vmem:[#allocation8 + $0x118] sm:$0xf0] }
 0x11a   :  { %2306 = vmatpush.bf16.msrb.mxu3 %v3823_v52 }
 0x11b   :  { %2332 = vmatpush.bf16.msra.mxu0 %v3715_v53  ;;  %v1630_v53 = vadd.f32 %v1629_v33, %v1616_v40  ;;  %v1671_v22 = vpop.f32.mrf.mxu0  ;;  %v4334_v33 = vld [vmem:[#allocation8 + $0x154] sm:$0xf] }
 0x11c   :  { %2295 = vmatpush.bf16.msrb.mxu2 %v3735_v16  ;;  %v3744_v16 = vld [vmem:[#allocation8 + $0x98] sm:$0xf0] }
 0x11d   :  { %v1644_v59 = vadd.f32 %v1643_v45, %v1630_v53  ;;  %v3919_v53 = vor.u32 %v4355_v51, %v3918_v50  ;;  %v4350_v50 = vld [vmem:[#allocation8 + $0x1d4] sm:$0xf]  ;;  %v3904_v51 = vld [vmem:[#allocation8 + $0x1d8] sm:$0xf0] }
 0x11e   :  { %2307 = vmatpush.bf16.msrb.mxu3 %v3815_v2  ;;  %v4324_v2 = vld [vmem:[#allocation8 + $0x104] sm:$0xf] }
 0x11f   :  { %2333 = vmatpush.bf16.msra.mxu0 %v3707_v49  ;;  %v1631_v49 = vpop.f32.mrf.mxu1  ;;  %2316 = vmatpush.bf16.msrb.mxu1 %v3919_v53  ;;  %v3907_v53 = vor.u32 %v4350_v50, %v3904_v51 }
 0x120   :  { %2344 = vmatpush.bf16.msra.mxu2 %v3795_v3  ;;  %v1632_v3 = vadd.f32 %v1631_v49, %v1618_v57 }
 0x122   :  { %v1657_v58 = vpop.f32.mrf.mxu2  ;;  %v1646_v14 = vadd.f32 %v1645_v4, %v1632_v3  ;;  %2308 = vmatpush.bf16.msrb.mxu3 %v3807_v13  ;;  %v3800_v3 = vld [vmem:[#allocation8 + $0x108] sm:$0xf0]  ;;  %v3903_v13 = vor.u32 %v4351_v10, %v3902_v9 }
 0x123   :  { %2334 = vmatpush.bf16.msra.mxu0 %v3699_v6  ;;  %v1658_v5 = vadd.f32 %v1657_v58, %v1644_v59  ;;  %v3747_v6 = vor.u32 %v4310_v1, %v3744_v16  ;;  %v1673_v18 = vpop.f32.mrf.mxu0  ;;  %v3910_v59 = vld [vmem:[#allocation8 + $0x1e0] sm:$0xf]  ;;  %v3864_v9 = vld [vmem:[#allocation8 + $0x188] sm:$0xf0] }
 0x124   :  { %2345 = vmatpush.bf16.msra.mxu2 %v3787_v19 }
 0x125   :  { %v1672_v19 = vadd.f32 %v1671_v22, %v1658_v5  ;;  %v4326_v22 = vld [vmem:[#allocation8 + $0x114] sm:$0xf] }
 0x126   :  { %v3811_v49 = vor.u32 %v4326_v22, %v3808_v55  ;;  %v3896_v22 = vld [vmem:[#allocation8 + $0x1c8] sm:$0xf0] }
 0x127   :  { %2335 = vmatpush.bf16.msra.mxu0 %v3691_v24  ;;  %v3798_v24 = vld [vmem:[#allocation8 + $0x100] sm:$0xf]  ;;  %v1873_v28 = vmax.f32 %v1672_v19, 0.0  ;;  %v4349_v19 = vld [vmem:[#allocation8 + $0x1c4] sm:$0xf0] }
 0x128   :  { %2346 = vmatpush.bf16.msra.mxu2 %v3779_v23  ;;  %v3799_v17 = vor.u32 %v4325_v25, %v3798_v24  ;;  %v1685_v32 = vpop.f32.mrf.mxu1 }
 0x129   :  { %v1686_v42 = vadd.f32 %v1685_v32, %v404_v7 }
 0x12a   :  { %2309 = vmatpush.bf16.msrb.mxu3 %v3799_v17 }
 0x12b   :  { %2336 = vmatpush.bf16.msra.mxu0 %v3683_v34  ;;  %v3843_v34 = vor.u32 %v4334_v33, %v3840_v63 }
 0x12c   :  { %2347 = vmatpush.bf16.msra.mxu2 %v3771_v41  ;;  %v4330_v41 = vld [vmem:[#allocation8 + $0x134] sm:$0xf] }
 0x12d   :  { %v3827_v45 = vor.u32 %v4330_v41, %v3824_v43  ;;  %v4354_v41 = vld [vmem:[#allocation8 + $0x1f4] sm:$0xf]  ;;  %v3920_v43 = vld [vmem:[#allocation8 + $0x1f8] sm:$0xf0] }
 0x12e   :  { %2358 = vmatpush.bf16.msra.mxu3 %v3859_v62 }
 0x12f   :  { %2337 = vmatpush.bf16.msra.mxu0 %v3675_v46  ;;  %v4328_v46 = vld [vmem:[#allocation8 + $0x124] sm:$0xf] }
 0x130   :  { %2348 = vmatpush.bf16.msra.mxu2 %v3763_v54  ;;  %v1699_v35 = vpop.f32.mrf.mxu3  ;;  %v1687_v40 = vpop.f32.mrf.mxu1  ;;  %v3819_v52 = vor.u32 %v4328_v46, %v3816_v47  ;;  %v3912_v46 = vld [vmem:[#allocation8 + $0x1e8] sm:$0xf0] }
 0x131   :  { %v1700_v56 = vadd.f32 %v1699_v35, %v1686_v42  ;;  %v1688_v0 = vadd.f32 %v1687_v40, %v404_v7  ;;  %v3862_v7 = vld [vmem:[#allocation8 + $0x180] sm:$0xf]  ;;  %v3923_v42 = vor.u32 %v4354_v41, %v3920_v43  ;;  %v4357_v41 = vld [vmem:[#allocation10 + $0x8] sm:$0xff] }
 0x132   :  { %2338 = vmatmul.bf16.vlgmr.msra.gmra.mxu0 %v4849_v44  ;;  %v1659_v44 = vpop.f32.mrf.mxu2  ;;  %2359 = vmatpush.bf16.msra.mxu3 %v3851_v31  ;;  %v4345_v31 = vld [vmem:[#allocation8 + $0x1a4] sm:$0xf0] }
 0x133   :  { %v1660_v21 = vadd.f32 %v1659_v44, %v1646_v14  ;;  %v4369_v43 = vld [vmem:[#allocation10 + $0x68] sm:$0xff] }
 0x134   :  { %2349 = vmatpush.bf16.msra.mxu2 %v3755_v61  ;;  %v4353_v61 = vld [vmem:[#allocation8 + $0x1e4] sm:$0xf0] }
 0x135   :  { %v1674_v27 = vadd.f32 %v1673_v18, %v1660_v21  ;;  %v3911_v1 = vor.u32 %v4353_v61, %v3910_v59  ;;  %v3894_v18 = vld [vmem:[#allocation8 + $0x1c0] sm:$0xf]  ;;  %v405_v61 = vperm.slane %v4831_v20, 3 }
 0x136   :  { %2360 = vmatpush.bf16.msra.mxu3 %v3843_v34 }
 0x137   :  { %v1877_v29 = vmax.f32 %v1674_v27, 0.0  ;;  %2317 = vmatpush.bf16.msrb.mxu1 %v3911_v1  ;;  %v4347_v27 = vld [vmem:[#allocation8 + $0x1b4] sm:$0xf0] }
 0x138   :  { %2350 = vmatpush.bf16.msra.mxu2 %v3747_v6  ;;  %v1701_v57 = vpop.f32.mrf.mxu3  ;;  %v3803_v6 = vor.u32 %v4324_v2, %v3800_v3  ;;  %v4342_v2 = vld [vmem:[#allocation8 + $0x194] sm:$0xf]  ;;  %v3872_v3 = vld [vmem:[#allocation8 + $0x198] sm:$0xf0] }
 0x139   :  { %v1881_v23 = vpack.c.bf16 %v1877_v29, %v1873_v28  ;;  %v1702_v5 = vadd.f32 %v1701_v57, %v1688_v0  ;;  %v3887_v29 = vor.u32 %v4347_v27, %v3886_v48  ;;  %v4344_v0 = vld [vmem:[#allocation8 + $0x1a4] sm:$0xf] }
 0x13a   :  { %2361 = vmatpush.bf16.msra.mxu3 %v3835_v39  ;;  %v4341_v39 = vld [vmem:[#allocation8 + $0x184] sm:$0xf0] }
 0x13b   :  { %2296 = vmatmul.bf16.vlgmr.msrb.gmra.mxu2 %v1881_v23  ;;  %v1713_v36 = vpop.f32.mrf.mxu0  ;;  %2318 = vmatpush.bf16.msrb.mxu1 %v3903_v13  ;;  %v3863_v40 = vor.u32 %v4341_v39, %v3862_v7  ;;  %v4371_v7 = vld [vmem:[#allocation10 + $0x78] sm:$0xff]  ;;  %v4358_v39 = vld [vmem:[#allocation10 + $0x10] sm:$0xff] }
 0x13c   :  { %2351 = vmatpush.bf16.msra.mxu2 %v3739_v11  ;;  %v1714_v38 = vadd.f32 %v1713_v36, %v1700_v56  ;;  %v3895_v11 = vor.u32 %v4349_v19, %v3894_v18  ;;  %v3870_v36 = vld [vmem:[#allocation8 + $0x190] sm:$0xf] }
 0x13d   :  { %v3871_v37 = vor.u32 %v4343_v15, %v3870_v36  ;;  %v4361_v36 = vld [vmem:[#allocation10 + $0x28] sm:$0xff]  ;;  %v4360_v15 = vld [vmem:[#allocation10 + $0x20] sm:$0xff] }
 0x13e   :  { %2362 = vmatpush.bf16.msra.mxu3 %v3827_v45  ;;  %v4352_v45 = vld [vmem:[#allocation8 + $0x1e4] sm:$0xf] }
 0x13f   :  { %2319 = vmatpush.bf16.msrb.mxu1 %v3895_v11  ;;  %v3915_v47 = vor.u32 %v4352_v45, %v3912_v46  ;;  %v4368_v45 = vld [vmem:[#allocation10 + $0x60] sm:$0xff]  ;;  %v4367_v46 = vld [vmem:[#allocation10 + $0x58] sm:$0xff] }
 0x140   :  { %2538 = vmatpush.bf16.msrb.mxu2 %v4371_v7 }
 0x142   :  { %2363 = vmatpush.bf16.msra.mxu3 %v3819_v52  ;;  %v1727_v58 = vpop.f32.mrf.mxu2 }
 0x143   :  { %v1715_v54 = vpop.f32.mrf.mxu0  ;;  %v1728_v4 = vadd.f32 %v1727_v58, %v1714_v38  ;;  %2320 = vmatpush.bf16.msrb.mxu1 %v3887_v29  ;;  %v3888_v58 = vld [vmem:[#allocation8 + $0x1b8] sm:$0xf0]  ;;  %v3880_v38 = vld [vmem:[#allocation8 + $0x1a8] sm:$0xf0] }
 0x144   :  { %v1716_v14 = vadd.f32 %v1715_v54, %v1702_v5  ;;  %v4348_v54 = vld [vmem:[#allocation8 + $0x1c4] sm:$0xf] }
 0x145   :  { %v3899_v56 = vor.u32 %v4348_v54, %v3896_v22  ;;  %v1948_v54 = vld [vmem:[%s4882_s4] sm:$0x3]  ;;  %v4364_v22 = vld [vmem:[#allocation10 + $0x40] sm:$0xff] }
 0x146   :  { %2364 = vmatpush.bf16.msra.mxu3 %v3811_v49  ;;  %v4346_v49 = vld [vmem:[#allocation8 + $0x1b4] sm:$0xf] }
 0x147   :  { %v3891_v59 = vor.u32 %v4346_v49, %v3888_v58 }
 0x148   :  { %v1741_v16 = vpop.f32.mrf.mxu1 }
 0x149   :  { %v1742_v44 = vadd.f32 %v1741_v16, %v1728_v4  ;;  %v3883_v16 = vor.u32 %v4344_v0, %v3880_v38 }
 0x14a   :  { %2365 = vmatpush.bf16.msra.mxu3 %v3803_v6  ;;  %v1729_v21 = vpop.f32.mrf.mxu2  ;;  %v3875_v6 = vor.u32 %v4342_v2, %v3872_v3 }
 0x14b   :  { %2352 = vmatmul.bf16.vlgmr.msra.gmra.mxu2 %v1881_v23  ;;  %v1730_v25 = vadd.f32 %v1729_v21, %v1716_v14  ;;  %v3878_v23 = vld [vmem:[#allocation8 + $0x1a0] sm:$0xf] }
 0x14c   :  { %v3879_v32 = vor.u32 %v4345_v31, %v3878_v23 }
 0x14e   :  { %2321 = vmatpush.bf16.msrb.mxu1 %v3879_v32 }
 0x14f   :  { %v1769_v8 = vpop.f32.mrf.mxu0 }
 0x150   :  { %v1755_v12 = vpop.f32.mrf.mxu3  ;;  %v1743_v24 = vpop.f32.mrf.mxu1 }
 0x151   :  { %v1756_v17 = vadd.f32 %v1755_v12, %v1742_v44  ;;  %v1744_v26 = vadd.f32 %v1743_v24, %v1730_v25 }
 0x152   :  { %2322 = vmatpush.bf16.msrb.mxu1 %v3871_v37  ;;  %v4359_v37 = vld [vmem:[#allocation10 + $0x18] sm:$0xff] }
 0x153   :  { %v1770_v30 = vadd.f32 %v1769_v8, %v1756_v17  ;;  %v4340_v8 = vld [vmem:[#allocation8 + $0x184] sm:$0xf] }
 0x154   :  { %v3867_v20 = vor.u32 %v4340_v8, %v3864_v9 }
 0x155   :  { %v1874_v63 = vmax.f32 %v1770_v30, 0.0 }
 0x156   :  { %2323 = vmatpush.bf16.msrb.mxu1 %v3863_v40  ;;  %v4370_v40 = vld [vmem:[#allocation10 + $0x70] sm:$0xff] }
 0x157   :  { %v1771_v28 = vpop.f32.mrf.mxu0  ;;  %2539 = vmatpush.bf16.msrb.mxu2 %v4370_v40  ;;  %v4414_v40 = vld [vmem:[%s4884_s6] ss:$0 sm:$0xff] }
 0x158   :  { %v1757_v62 = vpop.f32.mrf.mxu3 }
 0x159   :  { %v1758_v60 = vadd.f32 %v1757_v62, %v1744_v26 }
 0x15a   :  { %2372 = vmatpush.bf16.msra.mxu1 %v3923_v42  ;;  %v4356_v42 = vld [vmem:[#allocation10] sm:$0xff] }
 0x15b   :  { %v1772_v33 = vadd.f32 %v1771_v28, %v1758_v60  ;;  %2540 = vmatpush.bf16.msrb.mxu2 %v4369_v43 }
 0x15d   :  { %v1878_v34 = vmax.f32 %v1772_v33, 0.0 }
 0x15e   :  { %2373 = vmatpush.bf16.msra.mxu1 %v3915_v47  ;;  %v4366_v47 = vld [vmem:[#allocation10 + $0x50] sm:$0xff] }
 0x15f   :  { %v1882_v35 = vpack.c.bf16 %v1878_v34, %v1874_v63  ;;  %v4363_v34 = vld [vmem:[#allocation10 + $0x38] sm:$0xff]  ;;  %2541 = vmatpush.bf16.msrb.mxu2 %v4368_v45 }
 0x160   :  { %2524 = vmatpush.bf16.msrb.mxu0 %v4363_v34  ;;  %v4372_v34 = vld [vmem:[#allocation11] sm:$0xff] }
 0x161   :  { %2310 = vmatmul.bf16.vlgmr.msrb.gmra.mxu3 %v1882_v35 }
 0x162   :  { %v1783_v52 = vpop.f32.mrf.mxu2  ;;  %2374 = vmatpush.bf16.msra.mxu1 %v3907_v53  ;;  %v4365_v53 = vld [vmem:[#allocation10 + $0x48] sm:$0xff] }
 0x163   :  { %v1784_v4 = vadd.f32 %v1783_v52, %v405_v61  ;;  %2542 = vmatpush.bf16.msrb.mxu2 %v4367_v46 }
 0x166   :  { %2375 = vmatpush.bf16.msra.mxu1 %v3899_v56 }
 0x167   :  { %2543 = vmatpush.bf16.msrb.mxu2 %v4366_v47 }
 0x168   :  { %v1797_v57 = vpop.f32.mrf.mxu1 }
 0x169   :  { %v1798_v13 = vadd.f32 %v1797_v57, %v1784_v4 }
 0x16a   :  { %v1785_v1 = vpop.f32.mrf.mxu2  ;;  %2376 = vmatpush.bf16.msra.mxu1 %v3891_v59 }
 0x16b   :  { %v1786_v14 = vadd.f32 %v1785_v1, %v405_v61  ;;  %2544 = vmatpush.bf16.msrb.mxu2 %v4365_v53  ;;  %v4383_v53 = vld [vmem:[#allocation13 + $0x18] sm:$0xff] }
 0x16e   :  { %2377 = vmatpush.bf16.msra.mxu1 %v3883_v16 }
 0x16f   :  { %v1825_v10 = vpop.f32.mrf.mxu0  ;;  %2545 = vmatpush.bf16.msrb.mxu2 %v4364_v22  ;;  %v4381_v22 = vld [vmem:[#allocation13 + $0x8] sm:$0xff] }
 0x170   :  { %v1811_v55 = vpop.f32.mrf.mxu3  ;;  %v1799_v12 = vpop.f32.mrf.mxu1 }
 0x171   :  { %2366 = vmatmul.bf16.vlgmr.msra.gmra.mxu3 %v1882_v35  ;;  %v1812_v18 = vadd.f32 %v1811_v55, %v1798_v13  ;;  %v1800_v19 = vadd.f32 %v1799_v12, %v1786_v14  ;;  %v4362_v35 = vld [vmem:[#allocation10 + $0x30] sm:$0xff]  ;;  %v1950_v55 = vperm.slane %v1948_v54, 0  ;;  %v1951_v12 = vperm.slane %v1948_v54, 1 }
 0x172   :  { %2378 = vmatpush.bf16.msra.mxu1 %v3875_v6  ;;  %2525 = vmatpush.bf16.msrb.mxu0 %v4362_v35  ;;  %v4387_v35 = vld [vmem:[#allocation13 + $0x38] sm:$0xff]  ;;  %v4382_v54 = vld [vmem:[#allocation13 + $0x10] sm:$0xff] }
 0x173   :  { %v1826_v24 = vadd.f32 %v1825_v10, %v1812_v18 }
 0x176   :  { %2379 = vmatpush.bf16.msra.mxu1 %v3867_v20  ;;  %2526 = vmatpush.bf16.msrb.mxu0 %v4361_v36  ;;  %v4386_v36 = vld [vmem:[#allocation13 + $0x30] sm:$0xff] }
 0x177   :  { %v1827_v17 = vpop.f32.mrf.mxu0 }
 0x178   :  { %v1813_v5 = vpop.f32.mrf.mxu3 }
 0x179   :  { %v1814_v25 = vadd.f32 %v1813_v5, %v1800_v19 }
 0x17a   :  { %2527 = vmatpush.bf16.msrb.mxu0 %v4360_v15  ;;  %v4385_v15 = vld [vmem:[#allocation13 + $0x28] sm:$0xff] }
 0x17b   :  { %v1828_v27 = vadd.f32 %v1827_v17, %v1814_v25 }
 0x17e   :  { %2528 = vmatpush.bf16.msrb.mxu0 %v4359_v37  ;;  %v4384_v37 = vld [vmem:[#allocation13 + $0x20] sm:$0xff] }
 0x182   :  { %v1839_v44 = vpop.f32.mrf.mxu2  ;;  %2529 = vmatpush.bf16.msrb.mxu0 %v4358_v39 }
 0x183   :  { %v1840_v26 = vadd.f32 %v1839_v44, %v1826_v24 }
 0x184   :  { %v1867_v21 = vpop.f32.mrf.mxu3 }
 0x186   :  { %2530 = vmatpush.bf16.msrb.mxu0 %v4357_v41 }
 0x188   :  { %v1853_v11 = vpop.f32.mrf.mxu1 }
 0x189   :  { %v1854_v62 = vadd.f32 %v1853_v11, %v1840_v26 }
 0x18a   :  { %v1841_v48 = vpop.f32.mrf.mxu2  ;;  %2531 = vmatpush.bf16.msrb.mxu0 %v4356_v42 }
 0x18b   :  { %v1842_v28 = vadd.f32 %v1841_v48, %v1828_v27  ;;  %v1868_v30 = vadd.f32 %v1867_v21, %v1854_v62 }
 0x18c   :  { %v1869_v23 = vpop.f32.mrf.mxu3 }
 0x18d   :  { %v1875_v32 = vmax.f32 %v1868_v30, 0.0  ;;  %v4379_v30 = vld [vmem:[#allocation11 + $0x38] sm:$0xff] }
 0x18e   :  { %2623 = vmatpush.bf16.msrb.mxu3 %v4379_v30 }
 0x18f   :  { %v2283_v50 = vpop.f32.mrf.mxu0 }
 0x190   :  { %v1855_v29 = vpop.f32.mrf.mxu1  ;;  %v2284_v59 = vadd.f32 %v2283_v50, %v1950_v55 }
 0x191   :  { %v1856_v60 = vadd.f32 %v1855_v29, %v1842_v28 }
 0x193   :  { %v1870_v31 = vadd.f32 %v1869_v23, %v1856_v60  ;;  %v4378_v60 = vld [vmem:[#allocation11 + $0x30] sm:$0xff]  ;;  %v4377_v23 = vld [vmem:[#allocation11 + $0x28] sm:$0xff] }
 0x194   :  { %2624 = vmatpush.bf16.msrb.mxu3 %v4378_v60 }
 0x195   :  { %v1879_v33 = vmax.f32 %v1870_v31, 0.0  ;;  %v4376_v31 = vld [vmem:[#allocation11 + $0x20] sm:$0xff] }
 0x197   :  { %v1883_v63 = vpack.c.bf16 %v1879_v33, %v1875_v32  ;;  %v2285_v56 = vpop.f32.mrf.mxu0  ;;  %v4375_v32 = vld [vmem:[#allocation11 + $0x18] sm:$0xff]  ;;  %v4374_v33 = vld [vmem:[#allocation11 + $0x10] sm:$0xff] }
 0x198   :  { %v2286_v61 = vadd.f32 %v2285_v56, %v1950_v55  ;;  %2625 = vmatpush.bf16.msrb.mxu3 %v4377_v23  ;;  %v4380_v55 = vld [vmem:[#allocation13] sm:$0xff]  ;;  %v4395_v56 = vld [vmem:[#allocation14 + $0x38] sm:$0xff] }
 0x199   :  { %2324 = vmatmul.bf16.vlgmr.msrb.gmra.mxu1 %v1883_v63  ;;  %2793 = vmatpush.bf16.msra.mxu0 %v4395_v56 }
 0x19a   :  { %2708 = vmatpush.bf16.msrb.mxu1 %v4387_v35 }
 0x19c   :  { %2626 = vmatpush.bf16.msrb.mxu3 %v4376_v31 }
 0x19e   :  { %2709 = vmatpush.bf16.msrb.mxu1 %v4386_v36 }
 0x1a0   :  { %2627 = vmatpush.bf16.msrb.mxu3 %v4375_v32 }
 0x1a2   :  { %2710 = vmatpush.bf16.msrb.mxu1 %v4385_v15 }
 0x1a4   :  { %2628 = vmatpush.bf16.msrb.mxu3 %v4374_v33 }
 0x1a6   :  { %2711 = vmatpush.bf16.msrb.mxu1 %v4384_v37 }
 0x1a9   :  { %2380 = vmatmul.bf16.vlgmr.msra.gmra.mxu1 %v1883_v63  ;;  %v4373_v63 = vld [vmem:[#allocation11 + $0x8] sm:$0xff] }
 0x1aa   :  { %2629 = vmatpush.bf16.msrb.mxu3 %v4373_v63  ;;  %2712 = vmatpush.bf16.msrb.mxu1 %v4383_v53 }
 0x1ae   :  { %2630 = vmatpush.bf16.msrb.mxu3 %v4372_v34  ;;  %2713 = vmatpush.bf16.msrb.mxu1 %v4382_v54 }
 0x1af   :  { %v2339_v16 = vpop.f32.mrf.mxu0 }
 0x1b0   :  { %v2340_v20 = vadd.f32 %v2339_v16, %v1951_v12 }
 0x1b2   :  { %2714 = vmatpush.bf16.msrb.mxu1 %v4381_v22 }
 0x1b6   :  { %2715 = vmatpush.bf16.msrb.mxu1 %v4380_v55 }
 0x1b7   :  { %v2341_v14 = vpop.f32.mrf.mxu0 }
 0x1b8   :  { %v2342_v19 = vadd.f32 %v2341_v14, %v1951_v12 }
 0x1be   :  { %v2297_v51 = vpop.f32.mrf.mxu2 }
 0x1bf   :  { %v2298_v0 = vadd.f32 %v2297_v51, %v2284_v59 }
 0x1c6   :  { %v2299_v57 = vpop.f32.mrf.mxu2 }
 0x1c7   :  { %v2300_v38 = vadd.f32 %v2299_v57, %v2286_v61  ;;  %v4394_v57 = vld [vmem:[#allocation14 + $0x30] sm:$0xff]  ;;  %v4415_v61 = vld [vmem:[%s4886_s8] ss:$0 sm:$0xff] }
 0x1c8   :  { %2794 = vmatpush.bf16.msra.mxu0 %v4394_v57 }
 0x1ce   :  { %v2353_v4 = vpop.f32.mrf.mxu2 }
 0x1cf   :  { %v2354_v21 = vadd.f32 %v2353_v4, %v2340_v20  ;;  %v4391_v4 = vld [vmem:[#allocation14 + $0x18] sm:$0xff] }
 0x1d6   :  { %v2355_v18 = vpop.f32.mrf.mxu2 }
 0x1d7   :  { %v2356_v24 = vadd.f32 %v2355_v18, %v2342_v19  ;;  %v4417_v19 = vld [vmem:[%s4890_s12] ss:$0 sm:$0xff] }
 0x1e4   :  { %v2311_v52 = vpop.f32.mrf.mxu3 }
 0x1e5   :  { %v2312_v1 = vadd.f32 %v2311_v52, %v2298_v0 }
 0x1ec   :  { %v2313_v49 = vpop.f32.mrf.mxu3 }
 0x1ed   :  { %v2314_v2 = vadd.f32 %v2313_v49, %v2300_v38  ;;  %v4393_v49 = vld [vmem:[#allocation14 + $0x28] sm:$0xff] }
 0x1ee   :  { %2795 = vmatpush.bf16.msra.mxu0 %v4393_v49 }
 0x1f4   :  { %v2367_v8 = vpop.f32.mrf.mxu3 }
 0x1f5   :  { %v2368_v25 = vadd.f32 %v2367_v8, %v2354_v21  ;;  %v4388_v8 = vld [vmem:[#allocation14] sm:$0xff] }
 0x1fc   :  { %v2369_v11 = vpop.f32.mrf.mxu3 }
 0x1fd   :  { %v2370_v17 = vadd.f32 %v2369_v11, %v2356_v24 }
 0x216   :  { %v2325_v58 = vpop.f32.mrf.mxu1 }
 0x217   :  { %v2326_v3 = vadd.f32 %v2325_v58, %v2312_v1  ;;  %v4392_v58 = vld [vmem:[#allocation14 + $0x20] sm:$0xff] }
 0x218   :  { %2796 = vmatpush.bf16.msra.mxu0 %v4392_v58 }
 0x219   :  { %v2386_v9 = vmax.f32 %v2326_v3, 0.0 }
 0x21c   :  { %2797 = vmatpush.bf16.msra.mxu0 %v4391_v4 }
 0x21e   :  { %v2327_v5 = vpop.f32.mrf.mxu1 }
 0x21f   :  { %v2328_v6 = vadd.f32 %v2327_v5, %v2314_v2  ;;  %v4390_v5 = vld [vmem:[#allocation14 + $0x10] sm:$0xff] }
 0x220   :  { %2798 = vmatpush.bf16.msra.mxu0 %v4390_v5 }
 0x221   :  { %v2388_v10 = vmax.f32 %v2328_v6, 0.0  ;;  %v4389_v6 = vld [vmem:[#allocation14 + $0x8] sm:$0xff] }
 0x223   :  { %v2390_v13 = vpack.c.bf16 %v2388_v10, %v2386_v9  ;;  %v4416_v10 = vld [vmem:[%s4888_s10] ss:$0 sm:$0xff]  ;;  %s2815_s10 = sshll.u32 %s4891_s13, 4  ;;  %s2816_s10 = int_to_ptr.hbm [resolvable:$true] %s2815_s10 }
 0x224   :  { %2799 = vmatpush.bf16.msra.mxu0 %v4389_v6 }
 0x225   :  { %2532 = vmatmul.bf16.vlgmr.msrb.gmra.mxu0 %v2390_v13 }
 0x226   :  { %v2381_v44 = vpop.f32.mrf.mxu1 }
 0x227   :  { %v2382_v26 = vadd.f32 %v2381_v44, %v2368_v25 }
 0x228   :  { %2800 = vmatpush.bf16.msra.mxu0 %v4388_v8 }
 0x229   :  { %v2387_v62 = vmax.f32 %v2382_v26, 0.0 }
 0x22e   :  { %v2383_v48 = vpop.f32.mrf.mxu1 }
 0x22f   :  { %v2384_v27 = vadd.f32 %v2383_v48, %v2370_v17 }
 0x231   :  { %v2389_v28 = vmax.f32 %v2384_v27, 0.0 }
 0x233   :  { %v2391_v29 = vpack.c.bf16 %v2389_v28, %v2387_v62 }
 0x235   :  { %2546 = vmatmul.bf16.vlgmr.msrb.gmra.mxu2 %v2391_v29 }
 0x2a2   :  { %v2533_v7 = vpop.f32.mrf.mxu0 }
 0x2a3   :  { %v2534_v43 = vadd.f32 %v4414_v40, %v2533_v7 }
 0x2aa   :  { %v2535_v41 = vpop.f32.mrf.mxu0 }
 0x2ab   :  { %v2536_v42 = vadd.f32 %v4414_v40, %v2535_v41 }
 0x2b8   :  { %v2547_v39 = vpop.f32.mrf.mxu2 }
 0x2b9   :  { %v2548_v45 = vadd.f32 %v2547_v39, %v2534_v43 }
 0x2bb   :  { %v2552_v50 = vmax.f32 %v2548_v45, 0.0 }
 0x2c0   :  { %v2549_v46 = vpop.f32.mrf.mxu2 }
 0x2c1   :  { %v2550_v47 = vadd.f32 %v2549_v46, %v2536_v42 }
 0x2c3   :  { %v2553_v51 = vmax.f32 %v2550_v47, 0.0 }
 0x2c5   :  { %v2554_v52 = vpack.c.bf16 %v2553_v51, %v2552_v50 }
 0x2c7   :  { %2631 = vmatmul.bf16.vlgmr.msrb.gmra.mxu3 %v2554_v52 }
 0x34a   :  { %v2632_v59 = vpop.f32.mrf.mxu3 }
 0x34b   :  { %v2633_v0 = vadd.f32 %v4415_v61, %v2632_v59 }
 0x34d   :  { %v2637_v16 = vmax.f32 %v2633_v0, 0.0 }
 0x352   :  { %v2634_v38 = vpop.f32.mrf.mxu3 }
 0x353   :  { %v2635_v1 = vadd.f32 %v4415_v61, %v2634_v38 }
 0x355   :  { %v2638_v2 = vmax.f32 %v2635_v1, 0.0 }
 0x357   :  { %v2639_v3 = vpack.c.bf16 %v2638_v2, %v2637_v16 }
 0x359   :  { %2716 = vmatmul.bf16.vlgmr.msrb.gmra.mxu1 %v2639_v3 }
 0x3d6   :  { %v2717_v9 = vpop.f32.mrf.mxu1 }
 0x3d7   :  { %v2718_v12 = vadd.f32 %v4416_v10, %v2717_v9 }
 0x3d9   :  { %v2722_v44 = vmax.f32 %v2718_v12, 0.0 }
 0x3de   :  { %v2719_v13 = vpop.f32.mrf.mxu1 }
 0x3df   :  { %v2720_v14 = vadd.f32 %v4416_v10, %v2719_v13 }
 0x3e1   :  { %v2723_v20 = vmax.f32 %v2720_v14, 0.0 }
 0x3e3   :  { %v2724_v18 = vpack.c.bf16 %v2723_v20, %v2722_v44 }
 0x3e5   :  { %2801 = vmatmul.bf16.vlgmr.msra.gmra.mxu0 %v2724_v18 }
 0x462   :  { %v2802_v21 = vpop.f32.mrf.mxu0 }
 0x463   :  { %v2803_v11 = vadd.f32 %v4417_v19, %v2802_v21 }
 0x465   :  { %2807 = vst [vmem:[#allocation16] sm:$0xff] %v2803_v11 }
 0x46a   :  { %v2804_v24 = vpop.f32.mrf.mxu0 }
 0x46b   :  { %v2805_v25 = vadd.f32 %v4417_v19, %v2804_v24 }
 0x46d   :  { %2808 = vst [vmem:[#allocation16 + $0x8] sm:$0xff] %v2805_v25 }
 0x46e   :  { %2821 = dma.vmem_to_hbm [thread:$0]  %s2814_s1, 256, %s2816_s10, [#allocation4], %s4650_s20, %s4650_s20, %s4651_s21  }
 0x46f   :  { %4644 = dma.done.wait [#allocation4], 256  }
 0x470   :  { %4645 = vsyncadd [#allocation4], 4294967040 }
 0x471   :  { %2826 = vsyncpa [#allocation3], 1 }
 0x472   :  { %2827 = vsyncpa [#allocation6], 1 }
 0x473   :  { %2828 = vsyncpa [#allocation9], 1 }
 0x474   :  { %2829 = vsyncpa [#allocation12], 1 }
 0x475   :  { %2830 = vsyncpa [#allocation15], 1 }
 0x476   :  { %2831 = vsyncpa [#allocation4], 1 }

</bundles_post_ra>
